<compile_context>
chip_gen: v5e
topology: v5e:2x2
jax: 0.10.0
libtpu: 0.0.40
codegen_flags: <defaults>
</compile_context>

<pallas_src>
import jax
import jax.numpy as jnp
from jax.experimental import pallas as pl
from jax.experimental.pallas import tpu as pltpu


def se_block_kernel(x_ref, w1_ref, b1_ref, w2_ref, b2_ref, o_ref):
    # x_ref: (bt, C, L) in the input dtype; w1: (C, H); b1: (1, H); w2: (H, C); b2: (1, C).
    inv_l = jnp.float32(1.0 / x_ref.shape[-1])

    # Squeeze: f32-accumulated mean over the length (lane) axis -> XLU reduce.
    # NOTE: x_ref is indexed here and again in the scale below so the full block is
    # never held live as one value across the excitation matmuls (a multi-MiB tile
    # cannot sit in 64 vregs and would otherwise spill / copy to scratch VMEM).
    pooled = jnp.sum(x_ref[...], axis=-1, dtype=jnp.float32) * inv_l      # (bt, C) f32

    # Excitation: tiny MXU matmuls (K=C, N=C//16) — negligible, fully hidden under
    # the x stream once the grid is pipelined.
    h = jnp.dot(pooled, w1_ref[...], preferred_element_type=jnp.float32) + b1_ref[...]
    h = jnp.maximum(h, 0.0)                                               # (bt, H)
    s = jnp.dot(h, w2_ref[...], preferred_element_type=jnp.float32) + b2_ref[...]
    s = jax.nn.sigmoid(s)                                                 # (bt, C) f32

    # Scale: gate applied in f32 (matches the PyTorch reference for bf16 inputs),
    # single cast on the way to the output block.  The (bt, C) <-> (bt, C, 1)
    # relayouts are ~tens of vregs per step; left on the XLU (tiny).
    o_ref[...] = (s[:, :, None] * x_ref[...].astype(jnp.float32)).astype(o_ref.dtype)


# Keep per-operand block DMA well above the ~0.35 us fixed per-step overhead.
_DMA_FLOOR_BYTES = 512 * 1024


def _tpu_generation_defaults():
    """Generation-aware tiling policy (min grid steps / block budget / VMEM limit)."""
    try:
        kind = jax.devices()[0].device_kind.lower()
    except Exception:  # interpreter / AOT / non-TPU backends
        kind = ""
    if "v7" in kind:
        # 2 TensorCores/chip share the grid under "parallel" semantics and each TC
        # only has 64 MiB VMEM: want >= 8 steps per core and smaller blocks.
        return dict(min_steps=16,
                    block_budget_bytes=4 * 1024 * 1024,
                    vmem_limit_bytes=32 * 1024 * 1024)
    # v5e / v6e: single TensorCore, 128 MiB physical VMEM -> bigger blocks amortize
    # the per-step overhead (measured ~85% of HBM roofline at MiB-class tiles).
    return dict(min_steps=8,
                block_budget_bytes=8 * 1024 * 1024,
                vmem_limit_bytes=64 * 1024 * 1024)


def _pick_batch_tile(batch, per_sample_bytes, budget_bytes, min_steps):
    """Batch-tile size: enough grid steps for a pipelined steady state, blocks
    within the per-operand VMEM budget, per-step DMA above the step overhead."""
    cap_steps = max(1, batch // min_steps)                 # >= min_steps grid steps
    cap_bytes = max(1, budget_bytes // per_sample_bytes)   # per-operand VMEM budget
    bt = min(batch, cap_steps, cap_bytes)
    # Don't let the step-count cap shrink blocks below the DMA-efficiency floor.
    floor = min(batch, cap_bytes, pl.cdiv(_DMA_FLOOR_BYTES, per_sample_bytes))
    return max(1, bt, floor)


def se_block(x, w1, b1, w2, b2, *, block_budget_bytes=None, min_steps=None,
             vmem_limit_bytes=None, alias_input=False):
    """x: (B, C, L); w1: (C, H); b1: (H,); w2: (H, C); b2: (C,).

    Linear weights are stored pre-transposed ((in, out)) so the kernel does
    row-major MXU matmuls.  Set alias_input=True only if x is truly dead after the
    call (no other consumer, including gradients) — it reuses x's HBM buffer.
    """
    B, C, L = x.shape
    H = w1.shape[1]
    # Keep biases 2D so they map cleanly onto (sublane, lane) vregs.
    b1_2d = b1.reshape(1, H)
    b2_2d = b2.reshape(1, C)

    policy = _tpu_generation_defaults()
    if block_budget_bytes is None:
        block_budget_bytes = policy["block_budget_bytes"]
    if min_steps is None:
        min_steps = policy["min_steps"]
    if vmem_limit_bytes is None:
        vmem_limit_bytes = policy["vmem_limit_bytes"]

    itemsize = x.dtype.itemsize
    per_sample = C * L * itemsize
    bt = _pick_batch_tile(B, per_sample, block_budget_bytes, min_steps)
    # Non-divisor B -> masked last block (padded rows are computed and discarded;
    # the squeeze/scale are per-(b, c) row so there is no cross-row contamination).
    grid = (pl.cdiv(B, bt),)

    # If one (C, L) slab exceeds the budget we still run with bt=1 but must grow
    # the VMEM limit to cover the double-buffered in+out blocks.
    # TODO(synk): two-pass fallback (reduce pass -> scale pass, tiled over L) for
    # C*L slabs too large to fit in VMEM even at bt=1.
    param_bytes = (w1.size + b1.size + w2.size + b2.size) * w1.dtype.itemsize
    live_bytes = 4 * bt * per_sample + param_bytes + (2 << 20)
    vmem_limit_bytes = max(int(vmem_limit_bytes), int(live_bytes))

    cost = pl.CostEstimate(
        flops=2 * B * C * L + 4 * B * C * H + 4 * B * C,
        transcendentals=B * C,                               # sigmoid
        bytes_accessed=2 * B * C * L * itemsize + param_bytes,
    )

    return pl.pallas_call(
        se_block_kernel,
        out_shape=jax.ShapeDtypeStruct((B, C, L), x.dtype),
        grid=grid,
        in_specs=[
            pl.BlockSpec((bt, C, L), lambda i: (i, 0, 0)),   # streamed, double-buffered
            pl.BlockSpec((C, H), lambda i: (0, 0)),          # VMEM-resident weights
            pl.BlockSpec((1, H), lambda i: (0, 0)),
            pl.BlockSpec((H, C), lambda i: (0, 0)),
            pl.BlockSpec((1, C), lambda i: (0, 0)),
        ],
        out_specs=pl.BlockSpec((bt, C, L), lambda i: (i, 0, 0)),
        compiler_params=pltpu.CompilerParams(
            dimension_semantics=("parallel",),               # megacore sharding on v7x
            vmem_limit_bytes=vmem_limit_bytes,
        ),
        cost_estimate=cost,
        input_output_aliases=({0: 0} if alias_input else {}),
    )(x, w1, b1_2d, w2, b2_2d)


def se_block_ref(x, w1, b1, w2, b2):
    """Pure-JAX reference mirroring the PyTorch SEBlock forward."""
    pooled = jnp.mean(x.astype(jnp.float32), axis=-1)        # (B, C)
    h = jnp.maximum(pooled @ w1 + b1, 0.0)                   # (B, H)
    s = jax.nn.sigmoid(h @ w2 + b2)                          # (B, C)
    return (s[:, :, None] * x.astype(jnp.float32)).astype(x.dtype)


if __name__ == "__main__":
    # SEBlock operand shape inside the Critic: channel = num_critic_obs = 256,
    # length = seq_len = 256 (lane-dense, multiple of 128); hidden = 256 // 16 = 16.
    C, L = 256, 256
    H = C // 16

    key = jax.random.PRNGKey(0)
    kx, kx2, kw1, kb1, kw2, kb2 = jax.random.split(key, 6)

    # Deterministic synthetic parameters (nn.Linear-style, stored transposed: (in, out)).
    w1 = jax.random.normal(kw1, (C, H), dtype=jnp.float32) * 0.1
    b1 = jax.random.normal(kb1, (H,), dtype=jnp.float32) * 0.1
    w2 = jax.random.normal(kw2, (H, C), dtype=jnp.float32) * 0.1
    b2 = jax.random.normal(kb2, (C,), dtype=jnp.float32) * 0.1

    # Case 1: divisible batch (B=16 -> bt=2, >=8 grid steps): pipelined steady state.
    B = 16
    x = jax.random.normal(kx, (B, C, L), dtype=jnp.float32)
    out = jax.block_until_ready(se_block(x, w1, b1, w2, b2))
    ref = se_block_ref(x, w1, b1, w2, b2)
    assert out.shape == (B, C, L)
    assert jnp.allclose(out, ref, atol=1e-5, rtol=1e-5), "mismatch vs reference (B=16)"

    # Case 2: awkward batch (B=19 -> bt=2, pl.cdiv grid with a masked last block)
    # instead of degrading to bt=1 / tiny tiles.
    B2 = 19
    x2 = jax.random.normal(kx2, (B2, C, L), dtype=jnp.float32)
    out2 = jax.block_until_ready(se_block(x2, w1, b1, w2, b2))
    ref2 = se_block_ref(x2, w1, b1, w2, b2)
    assert out2.shape == (B2, C, L)
    assert jnp.allclose(out2, ref2, atol=1e-5, rtol=1e-5), "mismatch vs reference (B=19)"

    print("KERNEL_OK")
</pallas_src>

<mosaic_0001>
module attributes {stable_mosaic.version = 11 : i64} {
  func.func @se_block_kernel(%arg0: i32, %arg1: memref<2x256x256xf32, #tpu.memory_space<vmem>>, %arg2: memref<256x16xf32, #tpu.memory_space<vmem>>, %arg3: memref<1x16xf32, #tpu.memory_space<vmem>>, %arg4: memref<16x256xf32, #tpu.memory_space<vmem>>, %arg5: memref<1x256xf32, #tpu.memory_space<vmem>>, %arg6: memref<2x256x256xf32, #tpu.memory_space<vmem>>) attributes {dimension_semantics = [#tpu.dimension_semantics<parallel>], iteration_bounds = array<i64: 8>, scalar_prefetch = 0 : i64, scratch_operands = 0 : i64, tpu.core_type = #tpu.core_type<tc>, window_params = [{transform_indices = @transform_0, window_bounds = array<i64: 2, 256, 256>}, {pipeline_mode = #tpu.pipeline_mode<synchronous>, transform_indices = @transform_1, window_bounds = array<i64: 256, 16>}, {pipeline_mode = #tpu.pipeline_mode<synchronous>, transform_indices = @transform_2, window_bounds = array<i64: 1, 16>}, {pipeline_mode = #tpu.pipeline_mode<synchronous>, transform_indices = @transform_3, window_bounds = array<i64: 16, 256>}, {pipeline_mode = #tpu.pipeline_mode<synchronous>, transform_indices = @transform_4, window_bounds = array<i64: 1, 256>}, {transform_indices = @transform_5, window_bounds = array<i64: 2, 256, 256>}]} {
    %c0 = arith.constant 0 : index
    %c0_0 = arith.constant 0 : index
    %c0_1 = arith.constant 0 : index
    %0 = vector.load %arg1[%c0, %c0_0, %c0_1] : memref<2x256x256xf32, #tpu.memory_space<vmem>>, vector<2x256x256xf32>
    %cst = arith.constant dense<0.000000e+00> : vector<2x256xf32>
    %1 = vector.multi_reduction <add>, %0, %cst [2] : vector<2x256x256xf32> to vector<2x256xf32>
    %cst_2 = arith.constant 3.906250e-03 : f32
    %2 = vector.broadcast %cst_2 : f32 to vector<2x256xf32>
    %3 = arith.mulf %1, %2 : vector<2x256xf32>
    %c0_3 = arith.constant 0 : index
    %c0_4 = arith.constant 0 : index
    %4 = vector.load %arg2[%c0_3, %c0_4] : memref<256x16xf32, #tpu.memory_space<vmem>>, vector<256x16xf32>
    %cst_5 = arith.constant dense<0.000000e+00> : vector<2x16xf32>
    %5 = tpu.matmul %3, %4, %cst_5 {dimension_numbers = #tpu.dot_dimension_numbers<[1], [0], [0], [1], [0, 0, 1, 1], [], []>} : vector<2x256xf32>, vector<256x16xf32>, vector<2x16xf32> -> vector<2x16xf32>
    %c0_6 = arith.constant 0 : index
    %c0_7 = arith.constant 0 : index
    %6 = vector.load %arg3[%c0_6, %c0_7] : memref<1x16xf32, #tpu.memory_space<vmem>>, vector<1x16xf32>
    %7 = vector.broadcast %6 : vector<1x16xf32> to vector<2x16xf32>
    %8 = arith.addf %5, %7 : vector<2x16xf32>
    %cst_8 = arith.constant 0.000000e+00 : f32
    %9 = vector.broadcast %cst_8 : f32 to vector<2x16xf32>
    %10 = arith.maximumf %8, %9 : vector<2x16xf32>
    %c0_9 = arith.constant 0 : index
    %c0_10 = arith.constant 0 : index
    %11 = vector.load %arg4[%c0_9, %c0_10] : memref<16x256xf32, #tpu.memory_space<vmem>>, vector<16x256xf32>
    %cst_11 = arith.constant dense<0.000000e+00> : vector<2x256xf32>
    %12 = tpu.matmul %10, %11, %cst_11 {dimension_numbers = #tpu.dot_dimension_numbers<[1], [0], [0], [1], [0, 0, 1, 1], [], []>} : vector<2x16xf32>, vector<16x256xf32>, vector<2x256xf32> -> vector<2x256xf32>
    %c0_12 = arith.constant 0 : index
    %c0_13 = arith.constant 0 : index
    %13 = vector.load %arg5[%c0_12, %c0_13] : memref<1x256xf32, #tpu.memory_space<vmem>>, vector<1x256xf32>
    %14 = vector.broadcast %13 : vector<1x256xf32> to vector<2x256xf32>
    %15 = arith.addf %12, %14 : vector<2x256xf32>
    %16 = arith.negf %15 : vector<2x256xf32>
    %17 = math.exp %16 : vector<2x256xf32>
    %cst_14 = arith.constant 1.000000e+00 : f32
    %18 = vector.broadcast %cst_14 : f32 to vector<2x256xf32>
    %19 = arith.addf %18, %17 : vector<2x256xf32>
    %20 = arith.divf %18, %19 : vector<2x256xf32>
    %21 = vector.shape_cast %20 : vector<2x256xf32> to vector<2x256x1xf32>
    %c0_15 = arith.constant 0 : index
    %c0_16 = arith.constant 0 : index
    %c0_17 = arith.constant 0 : index
    %22 = vector.load %arg1[%c0_15, %c0_16, %c0_17] : memref<2x256x256xf32, #tpu.memory_space<vmem>>, vector<2x256x256xf32>
    %23 = vector.broadcast %21 : vector<2x256x1xf32> to vector<2x256x256xf32>
    %24 = arith.mulf %23, %22 : vector<2x256x256xf32>
    %c0_18 = arith.constant 0 : index
    %c0_19 = arith.constant 0 : index
    %c0_20 = arith.constant 0 : index
    %25 = vector.load %arg6[%c0_18, %c0_19, %c0_20] : memref<2x256x256xf32, #tpu.memory_space<vmem>>, vector<2x256x256xf32>
    tpu.vector_store %arg6[%c0_18, %c0_19, %c0_20], %24 {strides = array<i32>} : memref<2x256x256xf32, #tpu.memory_space<vmem>>, vector<2x256x256xf32>,
    return
  }
  func.func @transform_0(%arg0: i32) -> (i32, i32, i32) {
    %c0_i32 = arith.constant 0 : i32
    %c0_i32_0 = arith.constant 0 : i32
    %c0_i32_1 = arith.constant 0 : i32
    return %arg0, %c0_i32, %c0_i32_0 : i32, i32, i32
  }
  func.func @transform_1(%arg0: i32) -> (i32, i32) {
    %c0_i32 = arith.constant 0 : i32
    %c0_i32_0 = arith.constant 0 : i32
    %c0_i32_1 = arith.constant 0 : i32
    return %c0_i32, %c0_i32_0 : i32, i32
  }
  func.func @transform_2(%arg0: i32) -> (i32, i32) {
    %c0_i32 = arith.constant 0 : i32
    %c0_i32_0 = arith.constant 0 : i32
    %c0_i32_1 = arith.constant 0 : i32
    return %c0_i32, %c0_i32_0 : i32, i32
  }
  func.func @transform_3(%arg0: i32) -> (i32, i32) {
    %c0_i32 = arith.constant 0 : i32
    %c0_i32_0 = arith.constant 0 : i32
    %c0_i32_1 = arith.constant 0 : i32
    return %c0_i32, %c0_i32_0 : i32, i32
  }
  func.func @transform_4(%arg0: i32) -> (i32, i32) {
    %c0_i32 = arith.constant 0 : i32
    %c0_i32_0 = arith.constant 0 : i32
    %c0_i32_1 = arith.constant 0 : i32
    return %c0_i32, %c0_i32_0 : i32, i32
  }
  func.func @transform_5(%arg0: i32) -> (i32, i32, i32) {
    %c0_i32 = arith.constant 0 : i32
    %c0_i32_0 = arith.constant 0 : i32
    %c0_i32_1 = arith.constant 0 : i32
    return %arg0, %c0_i32, %c0_i32_0 : i32, i32, i32
  }
}

</mosaic_0001>

<bundles_post_ra>
// kernel: tpu_custom_call.1
= control target key start
LH: loop header
LB: loop body
LE: loop exit
PB: predicated region body
PF: predicated region fallthrough
CT: control target
= control target key end

     0   :  { %10 = vsyncpa [#allocation3], 0  ;;  %s3405_s0 = inlined_call_operand.hbm [shape: f32[16,256,256], index: 0, kind: input, shape index: {}]   ;;  %s3406_s1 = inlined_call_operand.vmem [shape: f32[256,16], index: 1, kind: input, shape index: {}]   ;;  %s3407_s2 = inlined_call_operand.hbm [shape: f32[1,16], index: 2, kind: input, shape index: {}]   ;;  %s3408_s3 = inlined_call_operand.hbm [shape: f32[16,256], index: 3, kind: input, shape index: {}]   ;;  %s3409_s4 = inlined_call_operand.hbm [shape: f32[1,256], index: 4, kind: input, shape index: {}]   ;;  %s3410_s5 = inlined_call_operand.hbm [shape: f32[16,256,256], index: 5, kind: output, shape index: {}]  }
   0x1   :  { %12 = vsyncpa [#allocation3 + $0x1], 0 }
   0x2   :  { %13 = vsyncpa [#allocation6], 0 }
   0x3   :  { %14 = vsyncpa [#allocation9], 0 }
   0x4   :  { %15 = vsyncpa [#allocation4], 0 }
   0x5   :  { %17 = vsyncpa [#allocation4 + $0x1], 0  ;;  %s2381_s18 = smov 0   ;;  %s2383_s19 = smov 0  }
   0x6   :  { %s2385_s20 = smov 0   ;;  %s2387_s21 = smov 0  }
   0x7 LB: > { %s2402_s22 = sadd.s32 4294967295, %s2342_s21   ;;  %s1835_s23 = sadd.s32 4294967294, %s2342_s21   ;;  %s2342_s21 = sphi %s2387_s21, %s3422_s21   ;;  %s2338_s20 = sphi %s2385_s20, %s3421_s20   ;;  %s2334_s19 = sphi %s2383_s19, %s3420_s19   ;;  %s2330_s18 = sphi %s2381_s18, %s3419_s18  }
   0x8   : > { %p43_p0 = scmp.ne.s32.totalorder %s2334_s19, %s2330_s18  ;;  %p44_p1 = scmp.eq.s32.totalorder %s2402_s22, 0 }
   0x9   : > { %p151_p2 = scmp.eq.s32.totalorder %s2402_s22, 7  ;;  %p157_p3 = scmp.eq.s32.totalorder %s1835_s23, 7 }
   0xa   : > { %p2411_p4 = por %p44_p1, %p43_p0  ;;  %p1836_p5 = scmp.ge.s32.totalorder %s2342_s21, 1 }
   0xb   : > { %p2416_p6 = por %p157_p3, %p43_p0  ;;  %p164_p7 = scmp.lt.s32.totalorder %s2342_s21, 9 }
   0xc   : > { %s179_s28 = sshll.u32 %s3407_s2, 4  ;;  %s2344_s30 = smov [#allocation5]   ;;  %s180_s28 = int_to_ptr.hbm [resolvable:$true] %s179_s28 }
   0xd   : > { %p2424_p8 = pnand %p1836_p5, %p164_p7  ;;  %s181_s6 = sshll.u32 %s2344_s30, 4  ;;  %s182_s6 = int_to_ptr.vmem [resolvable:$true] %s181_s6 }
   0xe   : > { %s190_s9 = sshll.u32 %s3408_s3, 4  ;;  %s2345_s11 = smov [#allocation7]   ;;  %s191_s9 = int_to_ptr.hbm [resolvable:$true] %s190_s9 }
   0xf   : > { %p1881_p9 = pneg %p2424_p8  ;;  %s192_s12 = sshll.u32 %s2345_s11, 4  ;;  %s193_s12 = int_to_ptr.vmem [resolvable:$true] %s192_s12 }
  0x10   : > { %s3411_s13 = smov 256   ;;  %s2347_s14 = smov 16  }
  0x11   : > { %p2435_p10 = pnand %p1881_p9, %p44_p1  ;;  %s205_s17 = sshll.u32 %s3409_s4, 4  ;;  %s206_s17 = int_to_ptr.hbm [resolvable:$true] %s205_s17 }
  0x12   : > { %s2348_s23 = smov [#allocation8]   ;;  %s2452_s27 = sadd.s32 1, %s2342_s21  }
  0x13   : > { %1884 = dma.hbm_to_vmem [thread:$0]  (!%p2435_p10), %s180_s28, 16, %s182_s6, [#allocation6]  }
  0x14   : > { %1887 = dma.hbm_to_vmem [thread:$0]  (!%p2435_p10), %s191_s9, 512, %s193_s12, [#allocation6], %s3411_s13, %s3411_s13, %s2347_s14  }
  0x15   : > { %s207_s26 = sshll.u32 %s2348_s23, 4  ;;  %s27_s28 = ssub.s32 %s2342_s21, %s2452_s27  ;;  %s208_s26 = int_to_ptr.vmem [resolvable:$true] %s207_s26 }
  0x16   : > { %1890 = dma.hbm_to_vmem [thread:$0]  (!%p2435_p10), %s206_s17, 32, %s208_s26, [#allocation9]  }
  0x17   : > { %s30_s30 = sadd.s32 1, %s2338_s20  ;;  %p28_p11 = scmp.eq.s32.totalorder %s27_s28, 0 }
  0x18   : > { %p37_p12 = scmp.ne.s32.totalorder %s2338_s20, %s2334_s19  ;;  %p38_p13 = scmp.eq.s32.totalorder %s2342_s21, 0 }
  0x19   : > { %s2461_s6 = scalar_select %p28_p11, %s2338_s20, %s30_s30  }
  0x1a   : > { %p2465_p0 = por %p151_p2, %p37_p12  ;;  %p1902_p3 = scmp.lt.s32.totalorder %s2342_s21, 8 }
  0x1b   : > { %s218_s8 = sand.u32 1, %s2338_s20   ;;  %s1862_s9 = sshll.u32 %s2342_s21, 10 }
  0x1c   : > { %p39_p5 = por %p38_p13, %p37_p12  ;;  %s1841_s10 = sshll.u32 %s218_s8, 10 }
  0x1d   : > { %s228_s15 = scalar_lea.hbm %s3405_s0, %s1862_s9  ;;  %s222_s17 = scalar_lea.vmem [#allocation2], %s1841_s10 }
  0x1e   : > { %s229_s16 = sshll.u32 %s228_s15, 4  ;;  %s231_s23 = sshll.u32 %s222_s17, 4  ;;  %s230_s16 = int_to_ptr.hbm [resolvable:$true] %s229_s16  ;;  %s232_s23 = int_to_ptr.vmem [resolvable:$true] %s231_s23 }
  0x1f   : > { %p2475_p7 = pnand %p1902_p3, %p39_p5  ;;  %s219_s28 = scalar_lea.sflag [#allocation3], %s218_s8 }
  0x20   : > { %s2238_s30 = sshra.s32 %s230_s16, 4  ;;  %s2245_s10 = scalar_lea.hbm %s3405_s0, 8192  ;;  %s2239_s30 = int_to_ptr.hbm [resolvable:$true] %s2238_s30 }
  0x21   : > { %s2240_s13 = scalar_lea.hbm %s2239_s30, 1024  ;;  %p2242_p9 = pneg %p2475_p7 }
  0x22   : > { %p2241_p2 = scmp.ne.s32.totalorder %s2239_s30, %s2240_s13  ;;  %p2246_p12 = scmp.lt.s32.totalorder %s2239_s30, %s3405_s0 }
  0x23   : > { %p2247_p13 = scmp.lt.s32.totalorder %s2245_s10, %s2240_s13 }
  0x24   : > { %p2243_p10 = pnand %p2242_p9, %p2241_p2 }
  0x25   : > { %p2248_p3 = por %p2247_p13, %p2246_p12 }
  0x26   : > { %p2244_p11 = pneg %p2243_p10 }
  0x28   : > { %p2249_p5 = pnand %p2248_p3, %p2244_p11 }
  0x2a   : > { %2252 = shalt.err (!%p2249_p5)
}
  0x2b   : > { %s3418_s8 = smov 256   ;;  %243 = sbr.rel (%p2424_p8) target bundleno = 1164 (0x48c), region = 40 }
  0x2c   : > { %1894 = dma.hbm_to_vmem [thread:$0]  (!%p2475_p7), %s230_s16, 16384, %s232_s23, %s219_s28, %s3418_s8, %s3418_s8, %s2347_s14  }
  0x2d   : > { %s2495_s17 = sand.u32 (!%p2424_p8), 1, %s2334_s19  }
  0x2e   : > { %s1846_s13 = sshll.u32 (!%p2424_p8), %s2495_s17, 10  ;;  %s246_s30 = scalar_lea.sflag (!%p2424_p8), [#allocation3], %s2495_s17 }
  0x2f   : > { %s2501_s9 = scalar_lea.vmem (!%p2424_p8), [#allocation2], %s1846_s13 }
  0x30   : > { %2313 = dma.done.wait (%p2411_p4), %s246_s30, 16384  }
  0x31   : > { %2315 = vsyncadd (%p2411_p4), %s246_s30, 4294950912 }
  0x32   : > { %2317 = dma.done.wait (%p44_p1), [#allocation6], 528  }
  0x33   : > { %2319 = vsyncadd (%p44_p1), [#allocation6], 4294966768 }
  0x34   : > { %2321 = dma.done.wait (%p44_p1), [#allocation9], 32  }
  0x35   : > { %2323 = vsyncadd (%p44_p1), [#allocation9], 4294967264  ;;  %v298_v0 = vld [vmem:[%s2501_s9 + $0x20] sm:$0xff]  ;;  %v299_v1 = vld [vmem:[%s2501_s9 + $0x28] sm:$0xff]  ;;  %vm783_vm0 = vcmask 130112   ;;  %vm787_vm1 = vcmask 195712  }
  0x36   : > { %v294_v2 = vld [vmem:[%s2501_s9] sm:$0xff]  ;;  %v428_v3 = vadd.f32 %v299_v1, %v298_v0  ;;  %v295_v4 = vld [vmem:[%s2501_s9 + $0x8] sm:$0xff]  ;;  %v300_v9 = vld [vmem:[%s2501_s9 + $0x30] sm:$0xff]  ;;  %vm791_vm2 = vcmask 261312   ;;  %vm795_vm3 = vcmask 326912   ;;  %vm799_vm4 = vcmask 392512  }
  0x37   : > { %v302_v5 = vld [vmem:[%s2501_s9 + $0x40] sm:$0xff]  ;;  %v303_v6 = vld [vmem:[%s2501_s9 + $0x48] sm:$0xff]  ;;  %v422_v7 = vadd.f32 %v295_v4, %v294_v2  ;;  %v301_v10 = vld [vmem:[%s2501_s9 + $0x38] sm:$0xff]  ;;  %vm803_vm5 = vcmask 458112   ;;  %vm807_vm6 = vcmask 523712   ;;  %vm811_vm7 = vcmask 589312  }
  0x38   : > { %v434_v8 = vadd.f32 %v303_v6, %v302_v5  ;;  %429 = vadd.xlane.f32.xlu1 %v428_v3  ;;  %v296_v11 = vld [vmem:[%s2501_s9 + $0x10] sm:$0xff]  ;;  %v297_v12 = vld [vmem:[%s2501_s9 + $0x18] sm:$0xff]  ;;  %v431_v15 = vadd.f32 %v301_v10, %v300_v9  ;;  %v306_v20 = vld [vmem:[%s2501_s9 + $0x60] sm:$0xff]  ;;  %vm815_vm8 = vcmask 654912   ;;  %vm819_vm9 = vcmask 720512   ;;  %s3020_s30 = scalar_lea.vmem [#allocation10], %s1846_s13 }
  0x39   : > { %423 = vadd.xlane.f32.xlu0 %v422_v7  ;;  %v304_v13 = vld [vmem:[%s2501_s9 + $0x50] sm:$0xff]  ;;  %v305_v14 = vld [vmem:[%s2501_s9 + $0x58] sm:$0xff]  ;;  %v425_v16 = vadd.f32 %v297_v12, %v296_v11  ;;  %v307_v21 = vld [vmem:[%s2501_s9 + $0x68] sm:$0xff]  ;;  %vm823_vm10 = vcmask 786112   ;;  %vm827_vm11 = vcmask 851712   ;;  %vm831_vm12 = vcmask 917312  }
  0x3a   : > { %435 = vadd.xlane.f32.xlu2 %v434_v8  ;;  %v437_v17 = vadd.f32 %v305_v14, %v304_v13  ;;  %v308_v18 = vld [vmem:[%s2501_s9 + $0x70] sm:$0xff]  ;;  %v309_v19 = vld [vmem:[%s2501_s9 + $0x78] sm:$0xff]  ;;  %v310_v22 = vld [vmem:[%s2501_s9 + $0x80] sm:$0xff]  ;;  %v440_v25 = vadd.f32 %v307_v21, %v306_v20  ;;  %vm835_vm13 = vcmask 982912   ;;  %vm839_vm14 = vcmask 1048512   ;;  %s1864_s13 = sshll.u32 %s2402_s22, 10 }
  0x3b   : > { %v311_v23 = vld [vmem:[%s2501_s9 + $0x88] sm:$0xff]  ;;  %v443_v24 = vadd.f32 %v309_v19, %v308_v18  ;;  %v314_v27 = vld [vmem:[%s2501_s9 + $0xa0] sm:$0xff]  ;;  %v312_v29 = vld [vmem:[%s2501_s9 + $0x90] sm:$0xff]  ;;  %vm934_vm15 = vcmask 1041409   ;;  %s1729_s14 = scalar_lea.hbm %s3410_s5, %s1864_s13  ;;  %s1730_s16 = sshll.u32 %s3020_s30, 4  ;;  %s1731_s16 = int_to_ptr.vmem [resolvable:$true] %s1730_s16 }
  0x3c   : > { %v446_v26 = vadd.f32 %v311_v23, %v310_v22  ;;  %v315_v28 = vld [vmem:[%s2501_s9 + $0xa8] sm:$0xff]  ;;  %v313_v30 = vld [vmem:[%s2501_s9 + $0x98] sm:$0xff]  ;;  %v316_v31 = vld [vmem:[%s2501_s9 + $0xb0] sm:$0xff]  ;;  %s1732_s23 = sshll.u32 %s1729_s14, 4  ;;  %s1717_s26 = scalar_lea.sflag [#allocation4], %s2495_s17  ;;  %s1733_s23 = int_to_ptr.hbm [resolvable:$true] %s1732_s23 }
  0x3d   : > { %v317_v32 = vld [vmem:[%s2501_s9 + $0xb8] sm:$0xff]  ;;  %v452_v33 = vadd.f32 %v315_v28, %v314_v27  ;;  %v449_v34 = vadd.f32 %v313_v30, %v312_v29  ;;  %v320_v36 = vld [vmem:[%s2501_s9 + $0xd0] sm:$0xff]  ;;  %v318_v38 = vld [vmem:[%s2501_s9 + $0xc0] sm:$0xff]  ;;  %s2282_s28 = sshra.s32 %s1733_s23, 4  ;;  %s2288_s12 = scalar_lea.hbm %s3410_s5, 8192  ;;  %s2283_s28 = int_to_ptr.hbm [resolvable:$true] %s2282_s28 }
  0x3e   : > { %v455_v35 = vadd.f32 %v317_v32, %v316_v31  ;;  %v321_v37 = vld [vmem:[%s2501_s9 + $0xd8] sm:$0xff]  ;;  %v319_v39 = vld [vmem:[%s2501_s9 + $0xc8] sm:$0xff]  ;;  %v322_v40 = vld [vmem:[%s2501_s9 + $0xe0] sm:$0xff]  ;;  %s2284_s22 = scalar_lea.hbm %s2283_s28, 1024  ;;  %p2289_p7 = scmp.lt.s32.totalorder %s2283_s28, %s3410_s5 }
  0x3f   : > { %v323_v41 = vld [vmem:[%s2501_s9 + $0xe8] sm:$0xff]  ;;  %v461_v42 = vadd.f32 %v321_v37, %v320_v36  ;;  %v458_v43 = vadd.f32 %v319_v39, %v318_v38  ;;  %v326_v45 = vld [vmem:[%s2501_s9 + $0x100] sm:$0xff]  ;;  %v324_v47 = vld [vmem:[%s2501_s9 + $0xf0] sm:$0xff]  ;;  %p2285_p1 = scmp.ne.s32.totalorder %s2283_s28, %s2284_s22  ;;  %p2290_p2 = scmp.lt.s32.totalorder %s2288_s12, %s2284_s22 }
  0x40   : > { %432 = vadd.xlane.f32.xlu1 %v431_v15  ;;  %v464_v44 = vadd.f32 %v323_v41, %v322_v40  ;;  %v327_v46 = vld [vmem:[%s2501_s9 + $0x108] sm:$0xff]  ;;  %v325_v48 = vld [vmem:[%s2501_s9 + $0xf8] sm:$0xff]  ;;  %v328_v49 = vld [vmem:[%s2501_s9 + $0x110] sm:$0xff] }
  0x41   : > { %426 = vadd.xlane.f32.xlu0 %v425_v16  ;;  %v329_v50 = vld [vmem:[%s2501_s9 + $0x118] sm:$0xff]  ;;  %v470_v51 = vadd.f32 %v327_v46, %v326_v45  ;;  %v467_v52 = vadd.f32 %v325_v48, %v324_v47  ;;  %v332_v54 = vld [vmem:[%s2501_s9 + $0x130] sm:$0xff]  ;;  %v330_v56 = vld [vmem:[%s2501_s9 + $0x120] sm:$0xff]  ;;  %p2286_p4 = pnand %p2285_p1, %p2465_p0  ;;  %p2291_p9 = por %p2290_p2, %p2289_p7 }
  0x42   : > { %438 = vadd.xlane.f32.xlu2 %v437_v17  ;;  %v473_v53 = vadd.f32 %v329_v50, %v328_v49  ;;  %v333_v55 = vld [vmem:[%s2501_s9 + $0x138] sm:$0xff]  ;;  %v331_v57 = vld [vmem:[%s2501_s9 + $0x128] sm:$0xff]  ;;  %v334_v58 = vld [vmem:[%s2501_s9 + $0x140] sm:$0xff] }
  0x43   : > { %v335_v59 = vld [vmem:[%s2501_s9 + $0x148] sm:$0xff]  ;;  %v479_v60 = vadd.f32 %v333_v55, %v332_v54  ;;  %v476_v61 = vadd.f32 %v331_v57, %v330_v56  ;;  %v338_v63 = vld [vmem:[%s2501_s9 + $0x160] sm:$0xff]  ;;  %v336_v1 = vld [vmem:[%s2501_s9 + $0x150] sm:$0xff]  ;;  %p2287_p8 = pneg %p2286_p4 }
  0x44   : > { %v482_v62 = vadd.f32 %v335_v59, %v334_v58  ;;  %v339_v0 = vld [vmem:[%s2501_s9 + $0x168] sm:$0xff]  ;;  %v337_v2 = vld [vmem:[%s2501_s9 + $0x158] sm:$0xff]  ;;  %v340_v3 = vld [vmem:[%s2501_s9 + $0x170] sm:$0xff] }
  0x45   : > { %v341_v4 = vld [vmem:[%s2501_s9 + $0x178] sm:$0xff]  ;;  %v488_v5 = vadd.f32 %v339_v0, %v338_v63  ;;  %v485_v6 = vadd.f32 %v337_v2, %v336_v1  ;;  %v344_v8 = vld [vmem:[%s2501_s9 + $0x190] sm:$0xff]  ;;  %v342_v10 = vld [vmem:[%s2501_s9 + $0x180] sm:$0xff]  ;;  %p2292_p10 = pnand %p2291_p9, %p2287_p8 }
  0x46   : > { %v491_v7 = vadd.f32 %v341_v4, %v340_v3  ;;  %v345_v9 = vld [vmem:[%s2501_s9 + $0x198] sm:$0xff]  ;;  %v343_v11 = vld [vmem:[%s2501_s9 + $0x188] sm:$0xff]  ;;  %v346_v12 = vld [vmem:[%s2501_s9 + $0x1a0] sm:$0xff] }
  0x47   : > { %v347_v13 = vld [vmem:[%s2501_s9 + $0x1a8] sm:$0xff]  ;;  %v497_v14 = vadd.f32 %v345_v9, %v344_v8  ;;  %v494_v15 = vadd.f32 %v343_v11, %v342_v10  ;;  %v350_v17 = vld [vmem:[%s2501_s9 + $0x1c0] sm:$0xff]  ;;  %v348_v19 = vld [vmem:[%s2501_s9 + $0x1b0] sm:$0xff] }
  0x48   : > { %444 = vadd.xlane.f32.xlu1 %v443_v24  ;;  %v500_v16 = vadd.f32 %v347_v13, %v346_v12  ;;  %v351_v18 = vld [vmem:[%s2501_s9 + $0x1c8] sm:$0xff]  ;;  %v349_v20 = vld [vmem:[%s2501_s9 + $0x1b8] sm:$0xff]  ;;  %v352_v21 = vld [vmem:[%s2501_s9 + $0x1d0] sm:$0xff] }
  0x49   : > { %441 = vadd.xlane.f32.xlu0 %v440_v25  ;;  %v353_v22 = vld [vmem:[%s2501_s9 + $0x1d8] sm:$0xff]  ;;  %v506_v23 = vadd.f32 %v351_v18, %v350_v17  ;;  %v503_v24 = vadd.f32 %v349_v20, %v348_v19  ;;  %v354_v28 = vld [vmem:[%s2501_s9 + $0x1e0] sm:$0xff]  ;;  %v355_v29 = vld [vmem:[%s2501_s9 + $0x1e8] sm:$0xff]  ;;  %v778_v17 = vlaneseq }
  0x4a   : > { %447 = vadd.xlane.f32.xlu2 %v446_v26  ;;  %v509_v25 = vadd.f32 %v353_v22, %v352_v21  ;;  %v356_v26 = vld [vmem:[%s2501_s9 + $0x1f0] sm:$0xff]  ;;  %v357_v27 = vld [vmem:[%s2501_s9 + $0x1f8] sm:$0xff]  ;;  %v358_v30 = vld [vmem:[%s2501_s9 + $0x200] sm:$0xff] }
  0x4b   : > { %v359_v31 = vld [vmem:[%s2501_s9 + $0x208] sm:$0xff]  ;;  %v515_v32 = vadd.f32 %v357_v27, %v356_v26  ;;  %v360_v37 = vld [vmem:[%s2501_s9 + $0x210] sm:$0xff]  ;;  %v361_v38 = vld [vmem:[%s2501_s9 + $0x218] sm:$0xff]  ;;  %v2613_v21 = vand.u32 127, %v778_v17 }
  0x4c   : > { %v363_v36 = vld [vmem:[%s2501_s9 + $0x228] sm:$0xff]  ;;  %v364_v39 = vld [vmem:[%s2501_s9 + $0x230] sm:$0xff]  ;;  %v365_v40 = vld [vmem:[%s2501_s9 + $0x238] sm:$0xff] }
  0x4d   : > { %v369_v45 = vld [vmem:[%s2501_s9 + $0x258] sm:$0xff]  ;;  %v366_v46 = vld [vmem:[%s2501_s9 + $0x240] sm:$0xff]  ;;  %v367_v47 = vld [vmem:[%s2501_s9 + $0x248] sm:$0xff]  ;;  %v2621_v27 = vadd.s32 4294967280, %v2613_v21 }
  0x4e   : > { %v370_v48 = vld [vmem:[%s2501_s9 + $0x260] sm:$0xff]  ;;  %v371_v49 = vld [vmem:[%s2501_s9 + $0x268] sm:$0xff]  ;;  %v372_v55 = vld [vmem:[%s2501_s9 + $0x270] sm:$0xff] }
  0x4f   : > { %v375_v54 = vld [vmem:[%s2501_s9 + $0x288] sm:$0xff]  ;;  %v373_v56 = vld [vmem:[%s2501_s9 + $0x278] sm:$0xff]  ;;  %v376_v57 = vld [vmem:[%s2501_s9 + $0x290] sm:$0xff] }
  0x50   : > { %453 = vadd.xlane.f32.xlu1 %v452_v33  ;;  %v512_v33 = vadd.f32 %v355_v29, %v354_v28  ;;  %v377_v58 = vld [vmem:[%s2501_s9 + $0x298] sm:$0xff]  ;;  %v378_v0 = vld [vmem:[%s2501_s9 + $0x2a0] sm:$0xff]  ;;  %v379_v1 = vld [vmem:[%s2501_s9 + $0x2a8] sm:$0xff]  ;;  %v2624_v29 = vadd.s32 4294967272, %v2613_v21 }
  0x51   : > { %450 = vadd.xlane.f32.xlu0 %v449_v34  ;;  %v518_v34 = vadd.f32 %v359_v31, %v358_v30  ;;  %v381_v63 = vld [vmem:[%s2501_s9 + $0x2b8] sm:$0xff]  ;;  %v382_v2 = vld [vmem:[%s2501_s9 + $0x2c0] sm:$0xff]  ;;  %v383_v3 = vld [vmem:[%s2501_s9 + $0x2c8] sm:$0xff]  ;;  %v2627_v31 = vadd.s32 4294967288, %v2613_v21 }
  0x52   : > { %456 = vadd.xlane.f32.xlu2 %v455_v35  ;;  %v362_v35 = vld [vmem:[%s2501_s9 + $0x220] sm:$0xff]  ;;  %v387_v8 = vld [vmem:[%s2501_s9 + $0x2e8] sm:$0xff]  ;;  %v384_v9 = vld [vmem:[%s2501_s9 + $0x2d0] sm:$0xff] }
  0x53   : > { %v524_v41 = vadd.f32 %v363_v36, %v362_v35  ;;  %v385_v10 = vld [vmem:[%s2501_s9 + $0x2d8] sm:$0xff]  ;;  %v388_v11 = vld [vmem:[%s2501_s9 + $0x2f0] sm:$0xff]  ;;  %v395_v26 = vld [vmem:[%s2501_s9 + $0x328] sm:$0xff] }
  0x54   : > { %v389_v12 = vld [vmem:[%s2501_s9 + $0x2f8] sm:$0xff]  ;;  %v557_v18 = vadd.f32 %v385_v10, %v384_v9  ;;  %v392_v20 = vld [vmem:[%s2501_s9 + $0x310] sm:$0xff] }
  0x55   : > { %v563_v19 = vadd.f32 %v389_v12, %v388_v11  ;;  %v393_v22 = vld [vmem:[%s2501_s9 + $0x318] sm:$0xff] }
  0x56   : > { %v569_v36 = vadd.f32 %v393_v22, %v392_v20  ;;  %v406_v20 = vld [vmem:[%s2501_s9 + $0x380] sm:$0xff]  ;;  %v407_v22 = vld [vmem:[%s2501_s9 + $0x388] sm:$0xff] }
  0x58   : > { %462 = vadd.xlane.f32.xlu1 %v461_v42  ;;  %v521_v42 = vadd.f32 %v361_v38, %v360_v37 }
  0x59   : > { %459 = vadd.xlane.f32.xlu0 %v458_v43  ;;  %v527_v43 = vadd.f32 %v365_v40, %v364_v39  ;;  %v2630_v39 = vadd.s32 4294967256, %v2613_v21 }
  0x5a   : > { %465 = vadd.xlane.f32.xlu2 %v464_v44  ;;  %v368_v44 = vld [vmem:[%s2501_s9 + $0x250] sm:$0xff] }
  0x5b   : > { %v533_v50 = vadd.f32 %v369_v45, %v368_v44 }
  0x60   : > { %471 = vadd.xlane.f32.xlu1 %v470_v51  ;;  %v530_v51 = vadd.f32 %v367_v47, %v366_v46 }
  0x61   : > { %468 = vadd.xlane.f32.xlu0 %v467_v52  ;;  %v536_v52 = vadd.f32 %v371_v49, %v370_v48  ;;  %v396_v48 = vld [vmem:[%s2501_s9 + $0x330] sm:$0xff] }
  0x62   : > { %474 = vadd.xlane.f32.xlu2 %v473_v53  ;;  %v374_v53 = vld [vmem:[%s2501_s9 + $0x280] sm:$0xff] }
  0x63   : > { %v542_v59 = vadd.f32 %v375_v54, %v374_v53  ;;  %v399_v53 = vld [vmem:[%s2501_s9 + $0x348] sm:$0xff] }
  0x68   : > { %480 = vadd.xlane.f32.xlu1 %v479_v60  ;;  %v539_v60 = vadd.f32 %v373_v56, %v372_v55  ;;  %v2648_v56 = vadd.s32 4294967240, %v2613_v21 }
  0x69   : > { %477 = vadd.xlane.f32.xlu0 %v476_v61  ;;  %v545_v61 = vadd.f32 %v377_v58, %v376_v57  ;;  %v400_v57 = vld [vmem:[%s2501_s9 + $0x350] sm:$0xff]  ;;  %v401_v58 = vld [vmem:[%s2501_s9 + $0x358] sm:$0xff] }
  0x6a   : > { %483 = vadd.xlane.f32.xlu2 %v482_v62  ;;  %v380_v62 = vld [vmem:[%s2501_s9 + $0x2b0] sm:$0xff] }
  0x6b   : > { %v551_v4 = vadd.f32 %v381_v63, %v380_v62  ;;  %v2657_v62 = vadd.s32 4294967232, %v2613_v21 }
  0x70   : > { %489 = vadd.xlane.f32.xlu1 %v488_v5  ;;  %v548_v5 = vadd.f32 %v379_v1, %v378_v0 }
  0x71   : > { %486 = vadd.xlane.f32.xlu0 %v485_v6  ;;  %v554_v6 = vadd.f32 %v383_v3, %v382_v2 }
  0x72   : > { %492 = vadd.xlane.f32.xlu2 %v491_v7  ;;  %v386_v7 = vld [vmem:[%s2501_s9 + $0x2e0] sm:$0xff] }
  0x78   : > { %498 = vadd.xlane.f32.xlu1 %v497_v14 }
  0x79   : > { %495 = vadd.xlane.f32.xlu0 %v494_v15 }
  0x7a   : > { %501 = vadd.xlane.f32.xlu2 %v500_v16  ;;  %v560_v16 = vadd.f32 %v387_v8, %v386_v7  ;;  %v581_v8 = vadd.f32 %v401_v58, %v400_v57 }
  0x80   : > { %507 = vadd.xlane.f32.xlu1 %v506_v23  ;;  %v390_v23 = vld [vmem:[%s2501_s9 + $0x300] sm:$0xff] }
  0x81   : > { %504 = vadd.xlane.f32.xlu0 %v503_v24  ;;  %v391_v24 = vld [vmem:[%s2501_s9 + $0x308] sm:$0xff] }
  0x82   : > { %510 = vadd.xlane.f32.xlu2 %v509_v25  ;;  %v394_v25 = vld [vmem:[%s2501_s9 + $0x320] sm:$0xff]  ;;  %v566_v37 = vadd.f32 %v391_v24, %v390_v23 }
  0x88   : > { %516 = vadd.xlane.f32.xlu1 %v515_v32 }
  0x89   : > { %513 = vadd.xlane.f32.xlu0 %v512_v33 }
  0x8a   : > { %519 = vadd.xlane.f32.xlu2 %v518_v34 }
  0x90   : > { %525 = vadd.xlane.f32.xlu1 %v524_v41  ;;  %v572_v41 = vadd.f32 %v395_v26, %v394_v25  ;;  %v2677_v25 = vadd.s32 4294967224, %v2613_v21  ;;  %v2680_v26 = vadd.s32 4294967208, %v2613_v21 }
  0x91   : > { %522 = vadd.xlane.f32.xlu0 %v521_v42  ;;  %v2633_v42 = vadd.s32 4294967264, %v2613_v21 }
  0x92   : > { %528 = vadd.xlane.f32.xlu2 %v527_v43 }
  0x98   : > { %534 = vadd.xlane.f32.xlu1 %v533_v50 }
  0x99   : > { %531 = vadd.xlane.f32.xlu0 %v530_v51  ;;  %v397_v51 = vld [vmem:[%s2501_s9 + $0x338] sm:$0xff] }
  0x9a   : > { %537 = vadd.xlane.f32.xlu2 %v536_v52  ;;  %v398_v52 = vld [vmem:[%s2501_s9 + $0x340] sm:$0xff]  ;;  %v575_v3 = vadd.f32 %v397_v51, %v396_v48  ;;  %v2691_v48 = vadd.s32 4294967192, %v2613_v21  ;;  %v413_v51 = vld [vmem:[%s2501_s9 + $0x3b8] sm:$0xff] }
  0xa0   : > { %543 = vadd.xlane.f32.xlu1 %v542_v59 }
  0xa1   : > { %540 = vadd.xlane.f32.xlu0 %v539_v60 }
  0xa2   : > { %546 = vadd.xlane.f32.xlu2 %v545_v61  ;;  %v2654_v61 = vadd.s32 4294967248, %v2613_v21 }
  0xa8   : > { %552 = vadd.xlane.f32.xlu1 %v551_v4  ;;  %v578_v4 = vadd.f32 %v399_v53, %v398_v52 }
  0xa9   : > { %549 = vadd.xlane.f32.xlu0 %v548_v5 }
  0xaa   : > { %555 = vadd.xlane.f32.xlu2 %v554_v6 }
  0xab   : > { %v430_v13 = vpop.xlane.xlu1 %429 }
  0xac   : > { %v424_v14 = vpop.xlane.xlu0 %423  ;;  %v616_v32 = vmul.f32 0.00390625, %v430_v13  ;;  %v402_v13 = vld [vmem:[%s2501_s9 + $0x360] sm:$0xff] }
  0xad   : > { %v436_v15 = vpop.xlane.xlu2 %435  ;;  %v614_v28 = vmul.f32 0.00390625, %v424_v14  ;;  %v404_v14 = vld [vmem:[%s2501_s9 + $0x370] sm:$0xff] }
  0xae   : > { %v618_v43 = vmul.f32 0.00390625, %v436_v15  ;;  %v786_v47 = vperm.slane %v616_v32, %v2621_v27  ;;  %v405_v15 = vld [vmem:[%s2501_s9 + $0x378] sm:$0xff] }
  0xaf   : > { %v780_v44 = vperm.slane %v614_v28, %v2613_v21 }
  0xb0   : > { %561 = vadd.xlane.f32.xlu1 %v560_v16  ;;  %v794_v54 = vperm.slane %v618_v43, %v2633_v42 }
  0xb1   : > { %558 = vadd.xlane.f32.xlu0 %v557_v18  ;;  %v2670_v18 = vadd.s32 4294967216, %v2613_v21 }
  0xb2   : > { %564 = vadd.xlane.f32.xlu2 %v563_v19  ;;  %v403_v19 = vld [vmem:[%s2501_s9 + $0x368] sm:$0xff] }
  0xb3   : > { %v433_v30 = vpop.xlane.xlu1 %432 }
  0xb4   : > { %v617_v33 = vmul.f32 0.00390625, %v433_v30  ;;  %v427_v34 = vpop.xlane.xlu0 %426 }
  0xb5   : > { %v439_v35 = vpop.xlane.xlu2 %438  ;;  %v615_v38 = vmul.f32 0.00390625, %v427_v34 }
  0xb6   : > { %v619_v40 = vmul.f32 0.00390625, %v439_v35  ;;  %v790_v45 = vperm.slane %v617_v33, %v2624_v29  ;;  %v587_v33 = vadd.f32 %v405_v15, %v404_v14  ;;  %v2715_v15 = vadd.s32 4294967176, %v2613_v21 }
  0xb7   : > { %v782_v46 = vperm.slane %v615_v38, %v2627_v31 }
  0xb8   : > { %570 = vadd.xlane.f32.xlu1 %v569_v36  ;;  %v798_v50 = vperm.slane %v619_v40, %v2630_v39  ;;  %v584_v36 = vadd.f32 %v403_v19, %v402_v13 }
  0xb9   : > { %v784_v49 = vsel %vm783_vm0, %v782_v46, %v780_v44  ;;  %567 = vadd.xlane.f32.xlu0 %v566_v37  ;;  %v590_v37 = vadd.f32 %v407_v22, %v406_v20  ;;  %v408_v44 = vld [vmem:[%s2501_s9 + $0x390] sm:$0xff]  ;;  %v411_v46 = vld [vmem:[%s2501_s9 + $0x3a8] sm:$0xff] }
  0xba   : > { %573 = vadd.xlane.f32.xlu2 %v572_v41  ;;  %v788_v55 = vsel %vm787_vm1, %v786_v47, %v784_v49  ;;  %v409_v49 = vld [vmem:[%s2501_s9 + $0x398] sm:$0xff] }
  0xbb   : > { %v792_v59 = vsel %vm791_vm2, %v790_v45, %v788_v55  ;;  %v445_v60 = vpop.xlane.xlu1 %444  ;;  %v410_v45 = vld [vmem:[%s2501_s9 + $0x3a0] sm:$0xff]  ;;  %v2701_v55 = vadd.s32 4294967184, %v2613_v21 }
  0xbc   : > { %v796_v63 = vsel %vm795_vm3, %v794_v54, %v792_v59  ;;  %v621_v0 = vmul.f32 0.00390625, %v445_v60  ;;  %v442_v1 = vpop.xlane.xlu0 %441  ;;  %v2698_v54 = vadd.s32 4294967200, %v2613_v21  ;;  %v596_v60 = vadd.f32 %v411_v46, %v410_v45 }
  0xbd   : > { %v448_v2 = vpop.xlane.xlu2 %447  ;;  %v800_v5 = vsel %vm799_vm4, %v798_v50, %v796_v63  ;;  %v620_v6 = vmul.f32 0.00390625, %v442_v1  ;;  %v412_v50 = vld [vmem:[%s2501_s9 + $0x3b0] sm:$0xff]  ;;  %v593_v1 = vadd.f32 %v409_v49, %v408_v44 }
  0xbe   : > { %v622_v7 = vmul.f32 0.00390625, %v448_v2  ;;  %v806_v9 = vperm.slane %v621_v0, %v2648_v56  ;;  %v599_v2 = vadd.f32 %v413_v51, %v412_v50 }
  0xbf   : > { %v802_v10 = vperm.slane %v620_v6, %v2654_v61 }
  0xc0   : > { %v810_v11 = vperm.slane %v622_v7, %v2657_v62  ;;  %579 = vadd.xlane.f32.xlu1 %v578_v4  ;;  %v414_v7 = vld [vmem:[%s2501_s9 + $0x3c0] sm:$0xff] }
  0xc1   : > { %v804_v12 = vsel %vm803_vm5, %v802_v10, %v800_v5  ;;  %576 = vadd.xlane.f32.xlu0 %v575_v3  ;;  %v415_v10 = vld [vmem:[%s2501_s9 + $0x3c8] sm:$0xff] }
  0xc2   : > { %582 = vadd.xlane.f32.xlu2 %v581_v8  ;;  %v808_v16 = vsel %vm807_vm6, %v806_v9, %v804_v12  ;;  %v416_v8 = vld [vmem:[%s2501_s9 + $0x3d0] sm:$0xff]  ;;  %v417_v9 = vld [vmem:[%s2501_s9 + $0x3d8] sm:$0xff]  ;;  %v419_v12 = vld [vmem:[%s2501_s9 + $0x3e8] sm:$0xff] }
  0xc3   : > { %v812_v23 = vsel %vm811_vm7, %v810_v11, %v808_v16  ;;  %v454_v24 = vpop.xlane.xlu1 %453  ;;  %v418_v11 = vld [vmem:[%s2501_s9 + $0x3e0] sm:$0xff] }
  0xc4   : > { %v624_v28 = vmul.f32 0.00390625, %v454_v24  ;;  %v451_v30 = vpop.xlane.xlu0 %450 }
  0xc5   : > { %v457_v32 = vpop.xlane.xlu2 %456  ;;  %v623_v34 = vmul.f32 0.00390625, %v451_v30  ;;  %v602_v30 = vadd.f32 %v415_v10, %v414_v7 }
  0xc6   : > { %v625_v35 = vmul.f32 0.00390625, %v457_v32  ;;  %v818_v38 = vperm.slane %v624_v28, %v2670_v18  ;;  %v608_v32 = vadd.f32 %v419_v12, %v418_v11 }
  0xc7   : > { %v814_v40 = vperm.slane %v623_v34, %v2677_v25 }
  0xc8   : > { %v822_v41 = vperm.slane %v625_v35, %v2680_v26  ;;  %588 = vadd.xlane.f32.xlu1 %v587_v33 }
  0xc9   : > { %v816_v43 = vsel %vm815_vm8, %v814_v40, %v812_v23  ;;  %585 = vadd.xlane.f32.xlu0 %v584_v36  ;;  %v605_v23 = vadd.f32 %v417_v9, %v416_v8  ;;  %v421_v40 = vld [vmem:[%s2501_s9 + $0x3f8] sm:$0xff] }
  0xca   : > { %591 = vadd.xlane.f32.xlu2 %v590_v37  ;;  %v820_v47 = vsel %vm819_vm9, %v818_v38, %v816_v43  ;;  %v420_v38 = vld [vmem:[%s2501_s9 + $0x3f0] sm:$0xff] }
  0xcb   : > { %v824_v52 = vsel %vm823_vm10, %v822_v41, %v820_v47  ;;  %v463_v53 = vpop.xlane.xlu1 %462  ;;  %v611_v49 = vadd.f32 %v421_v40, %v420_v38 }
  0xcc   : > { %v627_v57 = vmul.f32 0.00390625, %v463_v53  ;;  %v460_v58 = vpop.xlane.xlu0 %459 }
  0xcd   : > { %v466_v59 = vpop.xlane.xlu2 %465  ;;  %v626_v63 = vmul.f32 0.00390625, %v460_v58 }
  0xce   : > { %v628_v0 = vmul.f32 0.00390625, %v466_v59  ;;  %v830_v3 = vperm.slane %v627_v57, %v2691_v48 }
  0xcf   : > { %v826_v4 = vperm.slane %v626_v63, %v2698_v54 }
  0xd0   : > { %v834_v5 = vperm.slane %v628_v0, %v2701_v55  ;;  %597 = vadd.xlane.f32.xlu1 %v596_v60 }
  0xd1   : > { %v828_v6 = vsel %vm827_vm11, %v826_v4, %v824_v52  ;;  %594 = vadd.xlane.f32.xlu0 %v593_v1 }
  0xd2   : > { %600 = vadd.xlane.f32.xlu2 %v599_v2  ;;  %v832_v13 = vsel %vm831_vm12, %v830_v3, %v828_v6 }
  0xd3   : > { %v472_v14 = vpop.xlane.xlu1 %471  ;;  %v836_v16 = vsel %vm835_vm13, %v834_v5, %v832_v13 }
  0xd4   : > { %v630_v19 = vmul.f32 0.00390625, %v472_v14  ;;  %v469_v20 = vpop.xlane.xlu0 %468 }
  0xd5   : > { %v475_v22 = vpop.xlane.xlu2 %474  ;;  %v629_v24 = vmul.f32 0.00390625, %v469_v20 }
  0xd6   : > { %v631_v28 = vmul.f32 0.00390625, %v475_v22  ;;  %v841_v33 = vperm.slane %v630_v19, %v2613_v21 }
  0xd7   : > { %v838_v34 = vperm.slane %v629_v24, %v2715_v15 }
  0xd8   : > { %v842_v35 = vperm.slane %v631_v28, %v2627_v31  ;;  %606 = vadd.xlane.f32.xlu1 %v605_v23  ;;  %v692_v23 = vld [vmem:[%s3406_s1 + $0x70] sm:$0xff]  ;;  %v691_v28 = vld [vmem:[%s3406_s1 + $0x68] sm:$0xff] }
  0xd9   : > { %603 = vadd.xlane.f32.xlu0 %v602_v30  ;;  %v2723_v37 = vsel %vm839_vm14, %v838_v34, %v836_v16  ;;  %v693_v16 = vld [vmem:[%s3406_s1 + $0x78] sm:$0xff]  ;;  %v690_v34 = vld [vmem:[%s3406_s1 + $0x60] sm:$0xff] }
  0xda   : > { %v843_v36 = vsel %vm783_vm0, %v842_v35, %v841_v33  ;;  %609 = vadd.xlane.f32.xlu2 %v608_v32  ;;  %939 = vmatpush.msra.mxu0 %v693_v16 }
  0xdb   : > { %v481_v41 = vpop.xlane.xlu1 %480 }
  0xdc   : > { %v633_v43 = vmul.f32 0.00390625, %v481_v41  ;;  %v478_v44 = vpop.xlane.xlu0 %477  ;;  %940 = vmatpush.msra.mxu0 %v692_v23  ;;  %v678_v23 = vld [vmem:[%s3406_s1] sm:$0xff] }
  0xdd   : > { %v484_v45 = vpop.xlane.xlu2 %483  ;;  %v632_v46 = vmul.f32 0.00390625, %v478_v44 }
  0xde   : > { %v634_v47 = vmul.f32 0.00390625, %v484_v45  ;;  %v846_v50 = vperm.slane %v633_v43, %v2624_v29  ;;  %941 = vmatpush.msra.mxu0 %v691_v28  ;;  %v689_v43 = vld [vmem:[%s3406_s1 + $0x58] sm:$0xff] }
  0xdf   : > { %v844_v51 = vperm.slane %v632_v46, %v2621_v27 }
  0xe0   : > { %v848_v52 = vperm.slane %v634_v47, %v2633_v42  ;;  %942 = vmatpush.msra.mxu0 %v690_v34  ;;  %v688_v47 = vld [vmem:[%s3406_s1 + $0x50] sm:$0xff] }
  0xe1   : > { %v845_v53 = vsel %vm787_vm1, %v844_v51, %v843_v36  ;;  %612 = vadd.xlane.f32.xlu0 %v611_v49 }
  0xe2   : > { %v847_v57 = vsel %vm791_vm2, %v846_v50, %v845_v53  ;;  %943 = vmatpush.msra.mxu0 %v689_v43  ;;  %v687_v50 = vld [vmem:[%s3406_s1 + $0x48] sm:$0xff] }
  0xe3   : > { %v849_v58 = vsel %vm795_vm3, %v848_v52, %v847_v57  ;;  %v490_v59 = vpop.xlane.xlu1 %489  ;;  %v686_v57 = vld [vmem:[%s3406_s1 + $0x40] sm:$0xff] }
  0xe4   : > { %v636_v60 = vmul.f32 0.00390625, %v490_v59  ;;  %v487_v63 = vpop.xlane.xlu0 %486  ;;  %944 = vmatpush.msra.mxu0 %v688_v47 }
  0xe5   : > { %v493_v0 = vpop.xlane.xlu2 %492  ;;  %v635_v1 = vmul.f32 0.00390625, %v487_v63 }
  0xe6   : > { %v637_v2 = vmul.f32 0.00390625, %v493_v0  ;;  %v852_v3 = vperm.slane %v636_v60, %v2654_v61  ;;  %945 = vmatpush.msra.mxu0 %v687_v50  ;;  %v685_v0 = vld [vmem:[%s3406_s1 + $0x38] sm:$0xff] }
  0xe7   : > { %v850_v4 = vperm.slane %v635_v1, %v2630_v39 }
  0xe8   : > { %v854_v5 = vperm.slane %v637_v2, %v2648_v56  ;;  %946 = vmatpush.msra.mxu0 %v686_v57 }
  0xe9   : > { %v851_v6 = vsel %vm799_vm4, %v850_v4, %v849_v58  ;;  %v683_v4 = vld [vmem:[%s3406_s1 + $0x28] sm:$0xff] }
  0xea   : > { %v853_v7 = vsel %vm803_vm5, %v852_v3, %v851_v6  ;;  %947 = vmatpush.msra.mxu0 %v685_v0  ;;  %v684_v3 = vld [vmem:[%s3406_s1 + $0x30] sm:$0xff] }
  0xeb   : > { %v855_v8 = vsel %vm807_vm6, %v854_v5, %v853_v7  ;;  %v499_v9 = vpop.xlane.xlu1 %498 }
  0xec   : > { %v639_v10 = vmul.f32 0.00390625, %v499_v9  ;;  %v496_v11 = vpop.xlane.xlu0 %495  ;;  %948 = vmatpush.msra.mxu0 %v684_v3 }
  0xed   : > { %v502_v12 = vpop.xlane.xlu2 %501  ;;  %v638_v13 = vmul.f32 0.00390625, %v496_v11 }
  0xee   : > { %v640_v14 = vmul.f32 0.00390625, %v502_v12  ;;  %v858_v19 = vperm.slane %v639_v10, %v2677_v25  ;;  %949 = vmatpush.msra.mxu0 %v683_v4 }
  0xef   : > { %v856_v20 = vperm.slane %v638_v13, %v2657_v62  ;;  %v681_v13 = vld [vmem:[%s3406_s1 + $0x18] sm:$0xff] }
  0xf0   : > { %v860_v22 = vperm.slane %v640_v14, %v2670_v18  ;;  %v680_v14 = vld [vmem:[%s3406_s1 + $0x10] sm:$0xff] }
  0xf1   : > { %v857_v24 = vsel %vm811_vm7, %v856_v20, %v855_v8  ;;  %v682_v8 = vld [vmem:[%s3406_s1 + $0x20] sm:$0xff] }
  0xf2   : > { %v859_v30 = vsel %vm815_vm8, %v858_v19, %v857_v24  ;;  %950 = vmatpush.msra.mxu0 %v682_v8 }
  0xf3   : > { %v861_v32 = vsel %vm819_vm9, %v860_v22, %v859_v30  ;;  %v508_v33 = vpop.xlane.xlu1 %507  ;;  %v679_v22 = vld [vmem:[%s3406_s1 + $0x8] sm:$0xff] }
  0xf4   : > { %v642_v35 = vmul.f32 0.00390625, %v508_v33  ;;  %v505_v36 = vpop.xlane.xlu0 %504  ;;  %951 = vmatpush.msra.mxu0 %v681_v13 }
  0xf5   : > { %v511_v38 = vpop.xlane.xlu2 %510  ;;  %v641_v40 = vmul.f32 0.00390625, %v505_v36 }
  0xf6   : > { %v643_v41 = vmul.f32 0.00390625, %v511_v38  ;;  %v864_v44 = vperm.slane %v642_v35, %v2698_v54  ;;  %952 = vmatpush.msra.mxu0 %v680_v14 }
  0xf7   : > { %v862_v45 = vperm.slane %v641_v40, %v2680_v26 }
  0xf8   : > { %v866_v46 = vperm.slane %v643_v41, %v2691_v48  ;;  %953 = vmatpush.msra.mxu0 %v679_v22 }
  0xf9   : > { %v863_v49 = vsel %vm823_vm10, %v862_v45, %v861_v32 }
  0xfa   : > { %v865_v51 = vsel %vm827_vm11, %v864_v44, %v863_v49  ;;  %954 = vmatpush.msra.mxu0 %v678_v23  ;;  %v705_v23 = vld [vmem:[%s3406_s1 + $0xd8] sm:$0xff] }
  0xfb   : > { %v867_v52 = vsel %vm831_vm12, %v866_v46, %v865_v51  ;;  %v517_v53 = vpop.xlane.xlu1 %516 }
  0xfc   : > { %v645_v58 = vmul.f32 0.00390625, %v517_v53  ;;  %v514_v59 = vpop.xlane.xlu0 %513 }
  0xfd   : > { %v520_v60 = vpop.xlane.xlu2 %519  ;;  %v644_v63 = vmul.f32 0.00390625, %v514_v59 }
  0xfe   : > { %v870_v1 = vperm.slane %v645_v58, %v2715_v15  ;;  %v646_v11 = vmul.f32 0.00390625, %v520_v60 }
  0xff   : > { %v868_v2 = vperm.slane %v644_v63, %v2701_v55 }
 0x100   : > { %v872_v19 = vperm.slane %v646_v11, %v2613_v21 }
 0x101   : > { %v869_v5 = vsel %vm835_vm13, %v868_v2, %v867_v52  ;;  %v709_v2 = vld [vmem:[%s3406_s1 + $0xf8] sm:$0xff] }
 0x102   : > { %v2788_v6 = vsel %vm839_vm14, %v870_v1, %v869_v5  ;;  %959 = vmatpush.msra.mxu1 %v709_v2 }
 0x103   : > { %v526_v7 = vpop.xlane.xlu1 %525 }
 0x104   : > { %v523_v9 = vpop.xlane.xlu0 %522  ;;  %v648_v16 = vmul.f32 0.00390625, %v526_v7 }
 0x105   : > { %v529_v10 = vpop.xlane.xlu2 %528  ;;  %v647_v12 = vmul.f32 0.00390625, %v523_v9  ;;  %v708_v9 = vld [vmem:[%s3406_s1 + $0xf0] sm:$0xff] }
 0x106   : > { %v649_v24 = vmul.f32 0.00390625, %v529_v10  ;;  %v875_v30 = vperm.slane %v648_v16, %v2621_v27  ;;  %960 = vmatpush.msra.mxu1 %v708_v9  ;;  %v696_v9 = vld [vmem:[%s3406_s1 + $0x90] sm:$0xff] }
 0x107   : > { %v873_v20 = vperm.slane %v647_v12, %v2627_v31  ;;  %v707_v12 = vld [vmem:[%s3406_s1 + $0xe8] sm:$0xff] }
 0x108   : > { %v877_v36 = vperm.slane %v649_v24, %v2624_v29  ;;  %961 = vmatpush.msra.mxu1 %v707_v12 }
 0x109   : > { %v874_v34 = vsel %vm783_vm0, %v873_v20, %v872_v19  ;;  %v706_v19 = vld [vmem:[%s3406_s1 + $0xe0] sm:$0xff] }
 0x10a   : > { %v876_v40 = vsel %vm787_vm1, %v875_v30, %v874_v34  ;;  %962 = vmatpush.msra.mxu1 %v706_v19 }
 0x10b   : > { %v535_v28 = vpop.xlane.xlu1 %534  ;;  %v878_v44 = vsel %vm791_vm2, %v877_v36, %v876_v40  ;;  %v704_v36 = vld [vmem:[%s3406_s1 + $0xd0] sm:$0xff] }
 0x10c   : > { %v532_v32 = vpop.xlane.xlu0 %531  ;;  %v651_v38 = vmul.f32 0.00390625, %v535_v28  ;;  %963 = vmatpush.msra.mxu1 %v705_v23 }
 0x10d   : > { %v538_v33 = vpop.xlane.xlu2 %537  ;;  %v650_v35 = vmul.f32 0.00390625, %v532_v32 }
 0x10e   : > { %v652_v43 = vmul.f32 0.00390625, %v538_v33  ;;  %v881_v45 = vperm.slane %v651_v38, %v2630_v39  ;;  %964 = vmatpush.msra.mxu1 %v704_v36 }
 0x10f   : > { %v879_v41 = vperm.slane %v650_v35, %v2633_v42 }
 0x110   : > { %v883_v52 = vperm.slane %v652_v43, %v2654_v61  ;;  %v703_v43 = vld [vmem:[%s3406_s1 + $0xc8] sm:$0xff] }
 0x111   : > { %v880_v47 = vsel %vm795_vm3, %v879_v41, %v878_v44  ;;  %965 = vmatpush.msra.mxu1 %v703_v43 }
 0x112   : > { %v882_v57 = vsel %vm799_vm4, %v881_v45, %v880_v47 }
 0x113   : > { %v544_v46 = vpop.xlane.xlu1 %543  ;;  %v884_v60 = vsel %vm803_vm5, %v883_v52, %v882_v57 }
 0x114   : > { %v541_v49 = vpop.xlane.xlu0 %540  ;;  %v654_v53 = vmul.f32 0.00390625, %v544_v46  ;;  %v702_v46 = vld [vmem:[%s3406_s1 + $0xc0] sm:$0xff] }
 0x115   : > { %v547_v50 = vpop.xlane.xlu2 %546  ;;  %v653_v51 = vmul.f32 0.00390625, %v541_v49  ;;  %966 = vmatpush.msra.mxu1 %v702_v46 }
 0x116   : > { %v655_v59 = vmul.f32 0.00390625, %v547_v50  ;;  %v887_v63 = vperm.slane %v654_v53, %v2657_v62 }
 0x117   : > { %v885_v58 = vperm.slane %v653_v51, %v2648_v56  ;;  %v701_v51 = vld [vmem:[%s3406_s1 + $0xb8] sm:$0xff] }
 0x118   : > { %v889_v5 = vperm.slane %v655_v59, %v2677_v25  ;;  %967 = vmatpush.msra.mxu1 %v701_v51  ;;  %v699_v59 = vld [vmem:[%s3406_s1 + $0xa8] sm:$0xff] }
 0x119   : > { %v886_v0 = vsel %vm807_vm6, %v885_v58, %v884_v60  ;;  %v700_v58 = vld [vmem:[%s3406_s1 + $0xb0] sm:$0xff] }
 0x11a   : > { %v888_v10 = vsel %vm811_vm7, %v887_v63, %v886_v0  ;;  %968 = vmatpush.msra.mxu1 %v700_v58  ;;  %v698_v0 = vld [vmem:[%s3406_s1 + $0xa0] sm:$0xff] }
 0x11b   : > { %v553_v1 = vpop.xlane.xlu1 %552  ;;  %v890_v14 = vsel %vm815_vm8, %v889_v5, %v888_v10  ;;  %v695_v10 = vld [vmem:[%s3406_s1 + $0x88] sm:$0xff] }
 0x11c   : > { %v550_v3 = vpop.xlane.xlu0 %549  ;;  %v657_v7 = vmul.f32 0.00390625, %v553_v1  ;;  %969 = vmatpush.msra.mxu1 %v699_v59 }
 0x11d   : > { %v556_v4 = vpop.xlane.xlu2 %555  ;;  %v656_v8 = vmul.f32 0.00390625, %v550_v3 }
 0x11e   : > { %v658_v13 = vmul.f32 0.00390625, %v556_v4  ;;  %v893_v16 = vperm.slane %v657_v7, %v2680_v26  ;;  %970 = vmatpush.msra.mxu1 %v698_v0 }
 0x11f   : > { %v891_v11 = vperm.slane %v656_v8, %v2670_v18 }
 0x120   : > { %v895_v24 = vperm.slane %v658_v13, %v2698_v54 }
 0x121   : > { %v892_v20 = vsel %vm819_vm9, %v891_v11, %v890_v14  ;;  %v694_v11 = vld [vmem:[%s3406_s1 + $0x80] sm:$0xff] }
 0x122   : > { %v894_v33 = vsel %vm823_vm10, %v893_v16, %v892_v20 }
 0x123   : > { %v562_v22 = vpop.xlane.xlu1 %561  ;;  %v896_v44 = vsel %vm827_vm11, %v895_v24, %v894_v33 }
 0x124   : > { %v660_v28 = vmul.f32 0.00390625, %v562_v22  ;;  %v559_v30 = vpop.xlane.xlu0 %558 }
 0x125   : > { %v565_v32 = vpop.xlane.xlu2 %564  ;;  %v659_v34 = vmul.f32 0.00390625, %v559_v30 }
 0x126   : > { %v661_v35 = vmul.f32 0.00390625, %v565_v32  ;;  %v899_v38 = vperm.slane %v660_v28, %v2701_v55 }
 0x127   : > { %v897_v40 = vperm.slane %v659_v34, %v2691_v48 }
 0x128   : > { %v901_v41 = vperm.slane %v661_v35, %v2715_v15 }
 0x129   : > { %v898_v45 = vsel %vm831_vm12, %v897_v40, %v896_v44 }
 0x12a   : > { %v900_v47 = vsel %vm835_vm13, %v899_v38, %v898_v45 }
 0x12b   : > { %v571_v49 = vpop.xlane.xlu1 %570  ;;  %v902_v50 = vsel %vm839_vm14, %v901_v41, %v900_v47 }
 0x12c   : > { %v568_v52 = vpop.xlane.xlu0 %567  ;;  %v935_v57 = vsel %vm934_vm15, %v902_v50, %v2723_v37  ;;  %v663_v60 = vmul.f32 0.00390625, %v571_v49  ;;  %v697_v37 = vld [vmem:[%s3406_s1 + $0x98] sm:$0xff] }
 0x12d   : > { %v574_v53 = vpop.xlane.xlu2 %573  ;;  %955 = vmatmul.f32.vlgmr.msra.gmra.mxu0 %v935_v57  ;;  %v662_v63 = vmul.f32 0.00390625, %v568_v52  ;;  %971 = vmatpush.msra.mxu1 %v697_v37 }
 0x12e   : > { %v664_v2 = vmul.f32 0.00390625, %v574_v53  ;;  %v904_v5 = vperm.slane %v663_v60, %v2627_v31 }
 0x12f   : > { %v903_v7 = vperm.slane %v662_v63, %v2613_v21  ;;  %972 = vmatpush.msra.mxu1 %v696_v9 }
 0x130   : > { %v906_v12 = vperm.slane %v664_v2, %v2621_v27 }
 0x131   : > { %973 = vmatpush.msra.mxu1 %v695_v10  ;;  %v905_v21 = vsel %vm783_vm0, %v904_v5, %v903_v7  ;;  %v980_v5 = vld [vmem:[#allocation7] sm:$0xff]  ;;  %v2011_v7 = vld [vmem:[#allocation5] ss:$0 sm:$0xff]  ;;  %vm990_vm0 = vcmask 130048  }
 0x132   : > { %v907_v19 = vsel %vm787_vm1, %v906_v12, %v905_v21  ;;  %v984_v21 = vld [vmem:[#allocation8] sm:$0x3] }
 0x133   : > { %v580_v1 = vpop.xlane.xlu1 %579  ;;  %974 = vmatpush.msra.mxu1 %v694_v11 }
 0x134   : > { %v577_v3 = vpop.xlane.xlu0 %576  ;;  %v666_v13 = vmul.f32 0.00390625, %v580_v1 }
 0x135   : > { %v583_v4 = vpop.xlane.xlu2 %582  ;;  %v665_v8 = vmul.f32 0.00390625, %v577_v3 }
 0x136   : > { %v667_v14 = vmul.f32 0.00390625, %v583_v4  ;;  %v910_v20 = vperm.slane %v666_v13, %v2633_v42  ;;  %v982_v4 = vld [vmem:[#allocation7 + $0x10] sm:$0xff] }
 0x137   : > { %v908_v31 = vperm.slane %v665_v8, %v2624_v29  ;;  %1008 = vmatpush.msra.mxu2 %v982_v4  ;;  %v2021_v4 = vld [vmem:[%s2501_s9 + $0x18] sm:$0xff] }
 0x138   : > { %v912_v27 = vperm.slane %v667_v14, %v2630_v39 }
 0x139   : > { %v909_v24 = vsel %vm791_vm2, %v908_v31, %v907_v19  ;;  %1009 = vmatpush.msra.mxu2 %v980_v5  ;;  %v986_v31 = vperm.slane %v984_v21, 0 }
 0x13a   : > { %v911_v32 = vsel %vm795_vm3, %v910_v20, %v909_v24 }
 0x13b   : > { %v589_v16 = vpop.xlane.xlu1 %588  ;;  %v913_v34 = vsel %vm799_vm4, %v912_v27, %v911_v32 }
 0x13c   : > { %v586_v22 = vpop.xlane.xlu0 %585  ;;  %v669_v30 = vmul.f32 0.00390625, %v589_v16 }
 0x13d   : > { %v592_v23 = vpop.xlane.xlu2 %591  ;;  %v668_v28 = vmul.f32 0.00390625, %v586_v22 }
 0x13e   : > { %v670_v29 = vmul.f32 0.00390625, %v592_v23  ;;  %v916_v35 = vperm.slane %v669_v30, %v2648_v56 }
 0x13f   : > { %v914_v33 = vperm.slane %v668_v28, %v2654_v61  ;;  %v987_v28 = vperm.slane %v984_v21, 1 }
 0x140   : > { %v918_v43 = vperm.slane %v670_v29, %v2657_v62 }
 0x141   : > { %v915_v42 = vsel %vm803_vm5, %v914_v33, %v913_v34 }
 0x142   : > { %v917_v39 = vsel %vm807_vm6, %v916_v35, %v915_v42 }
 0x143   : > { %v598_v36 = vpop.xlane.xlu1 %597  ;;  %v919_v61 = vsel %vm811_vm7, %v918_v43, %v917_v39 }
 0x144   : > { %v595_v38 = vpop.xlane.xlu0 %594  ;;  %v672_v44 = vmul.f32 0.00390625, %v598_v36 }
 0x145   : > { %v601_v40 = vpop.xlane.xlu2 %600  ;;  %v671_v41 = vmul.f32 0.00390625, %v595_v38 }
 0x146   : > { %v673_v46 = vmul.f32 0.00390625, %v601_v40  ;;  %v922_v47 = vperm.slane %v672_v44, %v2670_v18 }
 0x147   : > { %v920_v45 = vperm.slane %v671_v41, %v2677_v25 }
 0x148   : > { %v924_v51 = vperm.slane %v673_v46, %v2680_v26 }
 0x149   : > { %v921_v56 = vsel %vm815_vm8, %v920_v45, %v919_v61 }
 0x14a   : > { %v923_v62 = vsel %vm819_vm9, %v922_v47, %v921_v56 }
 0x14b   : > { %v607_v49 = vpop.xlane.xlu1 %606  ;;  %v925_v25 = vsel %vm823_vm10, %v924_v51, %v923_v62 }
 0x14c   : > { %v604_v50 = vpop.xlane.xlu0 %603  ;;  %v675_v53 = vmul.f32 0.00390625, %v607_v49 }
 0x14d   : > { %v674_v52 = vmul.f32 0.00390625, %v604_v50  ;;  %v610_v57 = vpop.xlane.xlu2 %609 }
 0x14e   : > { %v676_v59 = vmul.f32 0.00390625, %v610_v57  ;;  %v928_v60 = vperm.slane %v675_v53, %v2691_v48  ;;  %v983_v48 = vld [vmem:[#allocation7 + $0x18] sm:$0xff] }
 0x14f   : > { %v926_v58 = vperm.slane %v674_v52, %v2698_v54  ;;  %1028 = vmatpush.msra.mxu3 %v983_v48 }
 0x150   : > { %v930_v63 = vperm.slane %v676_v59, %v2701_v55  ;;  %v981_v55 = vld [vmem:[#allocation7 + $0x8] sm:$0xff] }
 0x151   : > { %v927_v18 = vsel %vm827_vm11, %v926_v58, %v925_v25  ;;  %1029 = vmatpush.msra.mxu3 %v981_v55 }
 0x152   : > { %v929_v37 = vsel %vm831_vm12, %v928_v60, %v927_v18 }
 0x153   : > { %v931_v2 = vsel %vm835_vm13, %v930_v63, %v929_v37 }
 0x154   : > { %v613_v0 = vpop.xlane.xlu0 %612 }
 0x155   : > { %v677_v26 = vmul.f32 0.00390625, %v613_v0 }
 0x157   : > { %v932_v1 = vperm.slane %v677_v26, %v2715_v15 }
 0x159   : > { %v933_v3 = vsel %vm839_vm14, %v932_v1, %v931_v2 }
 0x15a   : > { %v936_v54 = vsel %vm934_vm15, %v933_v3, %v2788_v6  ;;  %v2920_v6 = vshrl.u32 %v778_v17, 7  ;;  %v2020_v3 = vld [vmem:[%s2501_s9 + $0x10] sm:$0xff] }
 0x15b   : > { %975 = vmatmul.f32.vlgmr.msra.gmra.mxu1 %v936_v54 }
 0x15c   : > { %1946 = vset.pattern.permute.xlu1 %v2920_v6  ;;  %v2924_v12 = vadd.s32 16, %v2920_v6  ;;  %v2927_v13 = vadd.s32 8, %v2920_v6  ;;  %v2940_v41 = vadd.s32 72, %v2920_v6  ;;  %v2943_v43 = vadd.s32 24, %v2920_v6 }
 0x15d   : > { %v2946_v44 = vadd.s32 32, %v2920_v6  ;;  %v2955_v46 = vadd.s32 112, %v2920_v6  ;;  %v2958_v61 = vadd.s32 40, %v2920_v6  ;;  %v2961_v56 = vadd.s32 48, %v2920_v6 }
 0x15e   : > { %1948 = vset.pattern.permute.xlu0 %v2924_v12  ;;  %1947 = vset.pattern.permute.xlu2 %v2927_v13  ;;  %v2970_v53 = vadd.s32 56, %v2920_v6  ;;  %v2973_v62 = vadd.s32 64, %v2920_v6  ;;  %v2987_v63 = vadd.s32 80, %v2920_v6  ;;  %v2990_v0 = vadd.s32 88, %v2920_v6 }
 0x15f   : > { %v2999_v37 = vadd.s32 104, %v2920_v6  ;;  %v3002_v26 = vadd.s32 96, %v2920_v6  ;;  %v3011_v1 = vadd.s32 120, %v2920_v6 }
 0x1aa   : > { %v956_v8 = vpop.f32.mrf.mxu0 }
 0x1ab   : > { %v957_v9 = vadd.f32 %v2011_v7, %v956_v8  ;;  %v2022_v7 = vld [vmem:[%s2501_s9 + $0x30] sm:$0xff] }
 0x1d8   : > { %v976_v15 = vpop.f32.mrf.mxu1 }
 0x1d9   : > { %v977_v10 = vadd.f32 %v976_v15, %v957_v9  ;;  %v2023_v9 = vld [vmem:[%s2501_s9 + $0x38] sm:$0xff] }
 0x1db   : > { %v979_v11 = vmax.f32 %v977_v10, 0.0 }
 0x1dd   : > { %1851 = vmatmul.msk.f32.vlgmr.msra.gmra.mxu2 %vm990_vm0, %v979_v11  ;;  %1852 = vmatmul.msk.f32.vlgmr.msra.gmra.mxu3 %vm990_vm0, %v979_v11  ;;  %v2024_v11 = vld [vmem:[%s2501_s9 + $0x20] sm:$0xff] }
 0x260   : > { %v1011_v14 = vpop.f32.mrf.mxu2  ;;  %v1031_v30 = vpop.f32.mrf.mxu3 }
 0x261   : > { %v1012_v16 = vadd.f32 %v1011_v14, %v986_v31  ;;  %v1032_v34 = vadd.f32 %v1031_v30, %v987_v28  ;;  %v2025_v31 = vld [vmem:[%s2501_s9 + $0x28] sm:$0xff] }
 0x263   : > { %v1853_v19 = vmul.f32 -1.442695, %v1012_v16  ;;  %v1854_v40 = vmul.f32 -1.442695, %v1032_v34  ;;  %v2031_v34 = vld [vmem:[%s2501_s9 + $0x98] sm:$0xff] }
 0x265   : > { %2012 = vpow2.f32 %v1853_v19  ;;  %v2026_v19 = vld [vmem:[%s2501_s9] sm:$0xff] }
 0x26b   : > { %v2013_v17 = vpop.eup %2012 }
 0x26c   : > { %v1040_v20 = vadd.f32 1.0, %v2013_v17 }
 0x26e   : > { %2014 = vrcp.f32 %v1040_v20  ;;  %v1053_v27 = vand.u32 2147483648, %v1040_v20  ;;  %v1051_v33 = vand.u32 2147483647, %v1040_v20  ;;  %vm1047_vm2 = vweird.f32 %v1040_v20 }
 0x26f   : > { %2016 = vpow2.f32 %v1854_v40  ;;  %v2033_v40 = vld [vmem:[%s2501_s9 + $0x48] sm:$0xff] }
 0x270   : > { %v1054_v35 = vor.u32 1.1754944e-38, %v1053_v27  ;;  %vm1052_vm4 = vcmp.eq.f32.partialorder %v1051_v33, 8.507059e+37  ;;  %v2029_v27 = vld [vmem:[%s2501_s9 + $0x58] sm:$0xff]  ;;  %v2030_v33 = vld [vmem:[%s2501_s9 + $0x90] sm:$0xff] }
 0x274   : > { %v2015_v22 = vpop.eup %2014 }
 0x275   : > { %v1043_v23 = vmul.f32 %v2015_v22, %v1040_v20  ;;  %vm1048_vm1 = vweird.f32 %v2015_v22  ;;  %v2017_v39 = vpop.eup %2016  ;;  %v2027_v20 = vld [vmem:[%s2501_s9 + $0x8] sm:$0xff] }
 0x276   : > { %vm1049_vm3 = vmor %vm1047_vm2, %vm1048_vm1  ;;  %v1041_v45 = vadd.f32 1.0, %v2017_v39 }
 0x277   : > { %v1044_v24 = vsub.f32 1.0, %v1043_v23 }
 0x278   : > { %2018 = vrcp.f32 %v1041_v45  ;;  %v1068_v57 = vand.u32 2147483648, %v1041_v45  ;;  %vm1062_vm6 = vweird.f32 %v1041_v45  ;;  %v1066_v58 = vand.u32 2147483647, %v1041_v45 }
 0x279   : > { %v1045_v32 = vmul.f32 %v2015_v22, %v1044_v24  ;;  %v2028_v24 = vld [vmem:[%s2501_s9 + $0x50] sm:$0xff] }
 0x27a   : > { %v1069_v25 = vor.u32 1.1754944e-38, %v1068_v57  ;;  %vm1067_vm8 = vcmp.eq.f32.partialorder %v1066_v58, 8.507059e+37  ;;  %v2036_v58 = vld [vmem:[%s2501_s9 + $0xe0] sm:$0xff] }
 0x27b   : > { %v1046_v29 = vadd.f32 %v2015_v22, %v1045_v32 }
 0x27d   : > { %v1050_v36 = vsel %vm1049_vm3, %v2015_v22, %v1046_v29 }
 0x27e   : > { %v2931_v42 = vsel %vm1052_vm4, %v1054_v35, %v1050_v36  ;;  %v2019_v47 = vpop.eup %2018 }
 0x27f   : > { %v2934_v38 = vperm.slane %v2931_v42, 0  ;;  %v1058_v49 = vmul.f32 %v2019_v47, %v1041_v45  ;;  %vm1063_vm5 = vweird.f32 %v2019_v47  ;;  %v3024_v5 = vperm.slane %v2931_v42, 1  ;;  %v2032_v42 = vld [vmem:[%s2501_s9 + $0x40] sm:$0xff] }
 0x280   : > { %vm1064_vm7 = vmor %vm1062_vm6, %vm1063_vm5 }
 0x281   : > { %1089 = vperm.xlu0 %1948, %v2934_v38   ;;  %1083 = vperm.xlu2 %1947, %v2934_v38   ;;  %v1059_v50 = vsub.f32 1.0, %v1058_v49 }
 0x282   : > { %1077 = vperm.xlu1 %1946, %v2934_v38  }
 0x283   : > { %v1060_v51 = vmul.f32 %v2019_v47, %v1059_v50  ;;  %v2035_v50 = vld [vmem:[%s2501_s9 + $0x78] sm:$0xff] }
 0x285   : > { %v1061_v52 = vadd.f32 %v2019_v47, %v1060_v51 }
 0x287   : > { %v1065_v59 = vsel %vm1064_vm7, %v2019_v47, %v1061_v52  ;;  %v2034_v47 = vld [vmem:[%s2501_s9 + $0x70] sm:$0xff] }
 0x288   : > { %v2978_v60 = vsel %vm1067_vm8, %v1069_v25, %v1065_v59  ;;  %v2037_v25 = vld [vmem:[%s2501_s9 + $0xe8] sm:$0xff] }
 0x289   : > { %1955 = vset.pattern.permute.xlu0 %v2940_v41  ;;  %1949 = vset.pattern.permute.xlu2 %v2943_v43  ;;  %v2981_v18 = vperm.slane %v2978_v60, 0  ;;  %v3073_v52 = vperm.slane %v2978_v60, 1  ;;  %v2038_v60 = vld [vmem:[%s2501_s9 + $0x60] sm:$0xff] }
 0x28a   : > { %1950 = vset.pattern.permute.xlu1 %v2946_v44 }
 0x291   : > { %1131 = vperm.xlu0 %1955, %v2934_v38   ;;  %1095 = vperm.xlu2 %1949, %v2934_v38  }
 0x292   : > { %1101 = vperm.xlu1 %1950, %v2934_v38  }
 0x299   : > { %1960 = vset.pattern.permute.xlu0 %v2955_v46  ;;  %1951 = vset.pattern.permute.xlu2 %v2958_v61 }
 0x29a   : > { %1952 = vset.pattern.permute.xlu1 %v2961_v56 }
 0x2a1   : > { %1161 = vperm.xlu0 %1960, %v2934_v38   ;;  %1107 = vperm.xlu2 %1951, %v2934_v38  }
 0x2a2   : > { %1113 = vperm.xlu1 %1952, %v2934_v38  }
 0x2a9   : > { %1965 = vset.pattern.permute.xlu0 %v2943_v43  ;;  %1953 = vset.pattern.permute.xlu2 %v2970_v53 }
 0x2aa   : > { %1954 = vset.pattern.permute.xlu1 %v2973_v62 }
 0x2b1   : > { %1192 = vperm.xlu0 %1965, %v2981_v18   ;;  %1119 = vperm.xlu2 %1953, %v2934_v38  }
 0x2b2   : > { %1125 = vperm.xlu1 %1954, %v2934_v38  }
 0x2b9   : > { %1970 = vset.pattern.permute.xlu0 %v2973_v62  ;;  %1956 = vset.pattern.permute.xlu2 %v2987_v63 }
 0x2ba   : > { %1957 = vset.pattern.permute.xlu1 %v2990_v0 }
 0x2c1   : > { %1222 = vperm.xlu0 %1970, %v2981_v18   ;;  %1137 = vperm.xlu2 %1956, %v2934_v38  }
 0x2c2   : > { %1143 = vperm.xlu1 %1957, %v2934_v38  }
 0x2c9   : > { %1975 = vset.pattern.permute.xlu0 %v2999_v37  ;;  %1958 = vset.pattern.permute.xlu2 %v3002_v26 }
 0x2ca   : > { %1959 = vset.pattern.permute.xlu1 %v2999_v37 }
 0x2d1   : > { %1252 = vperm.xlu0 %1975, %v2981_v18   ;;  %1149 = vperm.xlu2 %1958, %v2934_v38  }
 0x2d2   : > { %1155 = vperm.xlu1 %1959, %v2934_v38  }
 0x2d9   : > { %1980 = vset.pattern.permute.xlu0 %v2924_v12  ;;  %1961 = vset.pattern.permute.xlu2 %v3011_v1 }
 0x2da   : > { %1962 = vset.pattern.permute.xlu1 %v2920_v6 }
 0x2db   : > { %v1084_v2 = vpop.permute.xlu2 %1083 }
 0x2dc   : > { %v1462_v54 = vmul.f32 %v2020_v3, %v1084_v2  ;;  %v1463_v48 = vmul.f32 %v2021_v4, %v1084_v2  ;;  %v2039_v4 = vld [vmem:[%s2501_s9 + $0x68] sm:$0xff] }
 0x2de   : > { %1590 = vst [vmem:[%s3020_s30 + $0x10] sm:$0xff] %v1462_v54 }
 0x2df   : > { %1591 = vst [vmem:[%s3020_s30 + $0x18] sm:$0xff] %v1463_v48 }
 0x2e1   : > { %1283 = vperm.xlu0 %1980, %v3024_v5   ;;  %1167 = vperm.xlu2 %1961, %v2934_v38  }
 0x2e2   : > { %1174 = vperm.xlu1 %1962, %v2981_v18  }
 0x2e9   : > { %1985 = vset.pattern.permute.xlu0 %v2970_v53  ;;  %1963 = vset.pattern.permute.xlu2 %v2927_v13 }
 0x2ea   : > { %1964 = vset.pattern.permute.xlu1 %v2924_v12 }
 0x2eb   : > { %v1096_v55 = vpop.permute.xlu2 %1095 }
 0x2ec   : > { %v1466_v8 = vmul.f32 %v2022_v7, %v1096_v55  ;;  %v1467_v15 = vmul.f32 %v2023_v9, %v1096_v55  ;;  %v2040_v7 = vld [vmem:[%s2501_s9 + $0xa0] sm:$0xff]  ;;  %v2041_v9 = vld [vmem:[%s2501_s9 + $0xa8] sm:$0xff] }
 0x2ee   : > { %1594 = vst [vmem:[%s3020_s30 + $0x30] sm:$0xff] %v1466_v8 }
 0x2ef   : > { %1595 = vst [vmem:[%s3020_s30 + $0x38] sm:$0xff] %v1467_v15 }
 0x2f1   : > { %1313 = vperm.xlu0 %1985, %v3024_v5   ;;  %1180 = vperm.xlu2 %1963, %v2981_v18  }
 0x2f2   : > { %1186 = vperm.xlu1 %1964, %v2981_v18  }
 0x2f3   : > { %v1090_v10 = vpop.permute.xlu0 %1089 }
 0x2f4   : > { %v1464_v21 = vmul.f32 %v2024_v11, %v1090_v10  ;;  %v1465_v14 = vmul.f32 %v2025_v31, %v1090_v10  ;;  %v1078_v16 = vpop.permute.xlu1 %1077  ;;  %v2042_v11 = vld [vmem:[%s2501_s9 + $0x130] sm:$0xff]  ;;  %v2043_v31 = vld [vmem:[%s2501_s9 + $0x138] sm:$0xff] }
 0x2f5   : > { %v1460_v17 = vmul.f32 %v2026_v19, %v1078_v16  ;;  %v1461_v22 = vmul.f32 %v2027_v20, %v1078_v16  ;;  %v2044_v19 = vld [vmem:[%s2501_s9 + $0x80] sm:$0xff]  ;;  %v2045_v20 = vld [vmem:[%s2501_s9 + $0x88] sm:$0xff] }
 0x2f6   : > { %1592 = vst [vmem:[%s3020_s30 + $0x20] sm:$0xff] %v1464_v21 }
 0x2f7   : > { %1593 = vst [vmem:[%s3020_s30 + $0x28] sm:$0xff] %v1465_v14 }
 0x2f8   : > { %1588 = vst [vmem:[%s3020_s30] sm:$0xff] %v1460_v17 }
 0x2f9   : > { %1589 = vst [vmem:[%s3020_s30 + $0x8] sm:$0xff] %v1461_v22  ;;  %1990 = vset.pattern.permute.xlu0 %v3002_v26  ;;  %1966 = vset.pattern.permute.xlu2 %v2946_v44 }
 0x2fa   : > { %1967 = vset.pattern.permute.xlu1 %v2958_v61 }
 0x2fb   : > { %v1108_v23 = vpop.permute.xlu2 %1107 }
 0x2fc   : > { %v1470_v28 = vmul.f32 %v2028_v24, %v1108_v23  ;;  %v1471_v30 = vmul.f32 %v2029_v27, %v1108_v23  ;;  %v2046_v24 = vld [vmem:[%s2501_s9 + $0xc0] sm:$0xff]  ;;  %v2047_v27 = vld [vmem:[%s2501_s9 + $0xc8] sm:$0xff] }
 0x2fe   : > { %1598 = vst [vmem:[%s3020_s30 + $0x50] sm:$0xff] %v1470_v28 }
 0x2ff   : > { %1599 = vst [vmem:[%s3020_s30 + $0x58] sm:$0xff] %v1471_v30 }
 0x301   : > { %1343 = vperm.xlu0 %1990, %v3024_v5   ;;  %1198 = vperm.xlu2 %1966, %v2981_v18  }
 0x302   : > { %1204 = vperm.xlu1 %1967, %v2981_v18  }
 0x303   : > { %v1132_v32 = vpop.permute.xlu0 %1131 }
 0x304   : > { %v1478_v29 = vmul.f32 %v2030_v33, %v1132_v32  ;;  %v1479_v35 = vmul.f32 %v2031_v34, %v1132_v32  ;;  %v1102_v36 = vpop.permute.xlu1 %1101  ;;  %v2048_v33 = vld [vmem:[%s2501_s9 + $0x180] sm:$0xff]  ;;  %v2049_v34 = vld [vmem:[%s2501_s9 + $0x188] sm:$0xff] }
 0x305   : > { %v1468_v38 = vmul.f32 %v2032_v42, %v1102_v36  ;;  %v1469_v39 = vmul.f32 %v2033_v40, %v1102_v36  ;;  %v2050_v42 = vld [vmem:[%s2501_s9 + $0xb0] sm:$0xff]  ;;  %v2051_v40 = vld [vmem:[%s2501_s9 + $0xb8] sm:$0xff] }
 0x306   : > { %1606 = vst [vmem:[%s3020_s30 + $0x90] sm:$0xff] %v1478_v29 }
 0x307   : > { %1607 = vst [vmem:[%s3020_s30 + $0x98] sm:$0xff] %v1479_v35 }
 0x308   : > { %1596 = vst [vmem:[%s3020_s30 + $0x40] sm:$0xff] %v1468_v38 }
 0x309   : > { %1597 = vst [vmem:[%s3020_s30 + $0x48] sm:$0xff] %v1469_v39  ;;  %1995 = vset.pattern.permute.xlu0 %v2927_v13  ;;  %1968 = vset.pattern.permute.xlu2 %v2961_v56 }
 0x30a   : > { %1969 = vset.pattern.permute.xlu1 %v2970_v53 }
 0x30b   : > { %v1120_v45 = vpop.permute.xlu2 %1119 }
 0x30c   : > { %v1474_v49 = vmul.f32 %v2034_v47, %v1120_v45  ;;  %v1475_v51 = vmul.f32 %v2035_v50, %v1120_v45  ;;  %v2052_v47 = vld [vmem:[%s2501_s9 + $0xf0] sm:$0xff]  ;;  %v2053_v50 = vld [vmem:[%s2501_s9 + $0xf8] sm:$0xff] }
 0x30e   : > { %1602 = vst [vmem:[%s3020_s30 + $0x70] sm:$0xff] %v1474_v49 }
 0x30f   : > { %1603 = vst [vmem:[%s3020_s30 + $0x78] sm:$0xff] %v1475_v51 }
 0x311   : > { %1374 = vperm.xlu0 %1995, %v3073_v52   ;;  %1210 = vperm.xlu2 %1968, %v2981_v18  }
 0x312   : > { %1216 = vperm.xlu1 %1969, %v2981_v18  }
 0x313   : > { %v1162_v57 = vpop.permute.xlu0 %1161 }
 0x314   : > { %v1488_v59 = vmul.f32 %v2036_v58, %v1162_v57  ;;  %v1489_v2 = vmul.f32 %v2037_v25, %v1162_v57  ;;  %v1114_v3 = vpop.permute.xlu1 %1113  ;;  %v2054_v58 = vld [vmem:[%s2501_s9 + $0x1d0] sm:$0xff]  ;;  %v2055_v25 = vld [vmem:[%s2501_s9 + $0x1d8] sm:$0xff] }
 0x315   : > { %v1472_v54 = vmul.f32 %v2038_v60, %v1114_v3  ;;  %v1473_v48 = vmul.f32 %v2039_v4, %v1114_v3  ;;  %v2056_v60 = vld [vmem:[%s2501_s9 + $0xd0] sm:$0xff]  ;;  %v2057_v4 = vld [vmem:[%s2501_s9 + $0xd8] sm:$0xff] }
 0x316   : > { %1616 = vst [vmem:[%s3020_s30 + $0xe0] sm:$0xff] %v1488_v59 }
 0x317   : > { %1617 = vst [vmem:[%s3020_s30 + $0xe8] sm:$0xff] %v1489_v2 }
 0x318   : > { %1600 = vst [vmem:[%s3020_s30 + $0x60] sm:$0xff] %v1472_v54 }
 0x319   : > { %1601 = vst [vmem:[%s3020_s30 + $0x68] sm:$0xff] %v1473_v48  ;;  %2000 = vset.pattern.permute.xlu0 %v2961_v56  ;;  %1971 = vset.pattern.permute.xlu2 %v2940_v41 }
 0x31a   : > { %1972 = vset.pattern.permute.xlu1 %v2987_v63 }
 0x31b   : > { %v1138_v55 = vpop.permute.xlu2 %1137 }
 0x31c   : > { %v1480_v8 = vmul.f32 %v2040_v7, %v1138_v55  ;;  %v1481_v15 = vmul.f32 %v2041_v9, %v1138_v55  ;;  %v2058_v55 = vld [vmem:[%s2501_s9 + $0x110] sm:$0xff] }
 0x31e   : > { %1608 = vst [vmem:[%s3020_s30 + $0xa0] sm:$0xff] %v1480_v8  ;;  %v2059_v8 = vld [vmem:[%s2501_s9 + $0x118] sm:$0xff] }
 0x31f   : > { %1609 = vst [vmem:[%s3020_s30 + $0xa8] sm:$0xff] %v1481_v15 }
 0x321   : > { %1404 = vperm.xlu0 %2000, %v3073_v52   ;;  %1228 = vperm.xlu2 %1971, %v2981_v18  }
 0x322   : > { %1234 = vperm.xlu1 %1972, %v2981_v18  }
 0x323   : > { %v1193_v10 = vpop.permute.xlu0 %1192 }
 0x324   : > { %v1498_v21 = vmul.f32 %v2042_v11, %v1193_v10  ;;  %v1499_v14 = vmul.f32 %v2043_v31, %v1193_v10  ;;  %v1126_v16 = vpop.permute.xlu1 %1125  ;;  %v2060_v10 = vld [vmem:[%s2501_s9 + $0x220] sm:$0xff]  ;;  %v2061_v11 = vld [vmem:[%s2501_s9 + $0x228] sm:$0xff] }
 0x325   : > { %v1476_v17 = vmul.f32 %v2044_v19, %v1126_v16  ;;  %v1477_v22 = vmul.f32 %v2045_v20, %v1126_v16  ;;  %v2063_v19 = vld [vmem:[%s2501_s9 + $0x108] sm:$0xff] }
 0x326   : > { %1626 = vst [vmem:[%s3020_s30 + $0x130] sm:$0xff] %v1498_v21 }
 0x327   : > { %1627 = vst [vmem:[%s3020_s30 + $0x138] sm:$0xff] %v1499_v14  ;;  %v2062_v14 = vld [vmem:[%s2501_s9 + $0x100] sm:$0xff] }
 0x328   : > { %1604 = vst [vmem:[%s3020_s30 + $0x80] sm:$0xff] %v1476_v17 }
 0x329   : > { %1605 = vst [vmem:[%s3020_s30 + $0x88] sm:$0xff] %v1477_v22  ;;  %2005 = vset.pattern.permute.xlu0 %v2990_v0  ;;  %1973 = vset.pattern.permute.xlu2 %v2990_v0  ;;  %v2064_v22 = vld [vmem:[%s2501_s9 + $0x140] sm:$0xff] }
 0x32a   : > { %1974 = vset.pattern.permute.xlu1 %v3002_v26 }
 0x32b   : > { %v1150_v23 = vpop.permute.xlu2 %1149 }
 0x32c   : > { %v1484_v28 = vmul.f32 %v2046_v24, %v1150_v23  ;;  %v1485_v30 = vmul.f32 %v2047_v27, %v1150_v23  ;;  %v2065_v24 = vld [vmem:[%s2501_s9 + $0x148] sm:$0xff] }
 0x32e   : > { %1612 = vst [vmem:[%s3020_s30 + $0xc0] sm:$0xff] %v1484_v28 }
 0x32f   : > { %1613 = vst [vmem:[%s3020_s30 + $0xc8] sm:$0xff] %v1485_v30  ;;  %v2066_v30 = vld [vmem:[%s2501_s9 + $0x270] sm:$0xff] }
 0x331   : > { %1434 = vperm.xlu0 %2005, %v3073_v52   ;;  %1240 = vperm.xlu2 %1973, %v2981_v18  }
 0x332   : > { %1246 = vperm.xlu1 %1974, %v2981_v18  }
 0x333   : > { %v1223_v32 = vpop.permute.xlu0 %1222 }
 0x334   : > { %v1508_v29 = vmul.f32 %v2048_v33, %v1223_v32  ;;  %v1509_v35 = vmul.f32 %v2049_v34, %v1223_v32  ;;  %v1144_v36 = vpop.permute.xlu1 %1143  ;;  %v2067_v33 = vld [vmem:[%s2501_s9 + $0x278] sm:$0xff] }
 0x335   : > { %v1482_v38 = vmul.f32 %v2050_v42, %v1144_v36  ;;  %v1483_v39 = vmul.f32 %v2051_v40, %v1144_v36  ;;  %v2069_v42 = vld [vmem:[%s2501_s9 + $0x128] sm:$0xff] }
 0x336   : > { %1636 = vst [vmem:[%s3020_s30 + $0x180] sm:$0xff] %v1508_v29 }
 0x337   : > { %1637 = vst [vmem:[%s3020_s30 + $0x188] sm:$0xff] %v1509_v35  ;;  %v2068_v35 = vld [vmem:[%s2501_s9 + $0x120] sm:$0xff] }
 0x338   : > { %1610 = vst [vmem:[%s3020_s30 + $0xb0] sm:$0xff] %v1482_v38 }
 0x339   : > { %1611 = vst [vmem:[%s3020_s30 + $0xb8] sm:$0xff] %v1483_v39  ;;  %1976 = vset.pattern.permute.xlu2 %v2955_v46  ;;  %2010 = vset.pattern.permute.xlu0 %v3011_v1  ;;  %v2070_v39 = vld [vmem:[%s2501_s9 + $0x160] sm:$0xff] }
 0x33a   : > { %1977 = vset.pattern.permute.xlu1 %v3011_v1 }
 0x33b   : > { %v1168_v45 = vpop.permute.xlu2 %1167 }
 0x33c   : > { %v1490_v49 = vmul.f32 %v2052_v47, %v1168_v45  ;;  %v1491_v51 = vmul.f32 %v2053_v50, %v1168_v45  ;;  %v2071_v47 = vld [vmem:[%s2501_s9 + $0x168] sm:$0xff] }
 0x33e   : > { %1618 = vst [vmem:[%s3020_s30 + $0xf0] sm:$0xff] %v1490_v49 }
 0x33f   : > { %1619 = vst [vmem:[%s3020_s30 + $0xf8] sm:$0xff] %v1491_v51  ;;  %v2072_v51 = vld [vmem:[%s2501_s9 + $0x2c0] sm:$0xff] }
 0x341   : > { %1258 = vperm.xlu2 %1976, %v2981_v18  }
 0x342   : > { %1264 = vperm.xlu1 %1977, %v2981_v18  }
 0x343   : > { %v1253_v57 = vpop.permute.xlu0 %1252 }
 0x344   : > { %v1518_v59 = vmul.f32 %v2054_v58, %v1253_v57  ;;  %v1519_v2 = vmul.f32 %v2055_v25, %v1253_v57  ;;  %v1156_v3 = vpop.permute.xlu1 %1155  ;;  %v2073_v57 = vld [vmem:[%s2501_s9 + $0x2c8] sm:$0xff]  ;;  %v2074_v25 = vld [vmem:[%s2501_s9 + $0x150] sm:$0xff] }
 0x345   : > { %v1486_v54 = vmul.f32 %v2056_v60, %v1156_v3  ;;  %v1487_v48 = vmul.f32 %v2057_v4, %v1156_v3  ;;  %v2075_v3 = vld [vmem:[%s2501_s9 + $0x158] sm:$0xff]  ;;  %v2076_v4 = vld [vmem:[%s2501_s9 + $0x190] sm:$0xff] }
 0x346   : > { %1646 = vst [vmem:[%s3020_s30 + $0x1d0] sm:$0xff] %v1518_v59 }
 0x347   : > { %1647 = vst [vmem:[%s3020_s30 + $0x1d8] sm:$0xff] %v1519_v2 }
 0x348   : > { %1614 = vst [vmem:[%s3020_s30 + $0xd0] sm:$0xff] %v1486_v54 }
 0x349   : > { %1615 = vst [vmem:[%s3020_s30 + $0xd8] sm:$0xff] %v1487_v48  ;;  %1978 = vset.pattern.permute.xlu2 %v2920_v6 }
 0x34a   : > { %1979 = vset.pattern.permute.xlu1 %v2927_v13 }
 0x34b   : > { %v1181_v18 = vpop.permute.xlu2 %1180 }
 0x34c   : > { %v1494_v7 = vmul.f32 %v2058_v55, %v1181_v18  ;;  %v1495_v9 = vmul.f32 %v2059_v8, %v1181_v18  ;;  %v2077_v18 = vld [vmem:[%s2501_s9 + $0x198] sm:$0xff]  ;;  %v2078_v8 = vld [vmem:[%s2501_s9 + $0x310] sm:$0xff] }
 0x34e   : > { %1622 = vst [vmem:[%s3020_s30 + $0x110] sm:$0xff] %v1494_v7 }
 0x34f   : > { %1623 = vst [vmem:[%s3020_s30 + $0x118] sm:$0xff] %v1495_v9 }
 0x351   : > { %1271 = vperm.xlu2 %1978, %v3024_v5  }
 0x352   : > { %1277 = vperm.xlu1 %1979, %v3024_v5  }
 0x353   : > { %v1284_v15 = vpop.permute.xlu0 %1283 }
 0x354   : > { %v1528_v13 = vmul.f32 %v2060_v10, %v1284_v15  ;;  %v1529_v21 = vmul.f32 %v2061_v11, %v1284_v15  ;;  %v1175_v31 = vpop.permute.xlu1 %1174  ;;  %v2079_v15 = vld [vmem:[%s2501_s9 + $0x318] sm:$0xff]  ;;  %v2080_v11 = vld [vmem:[%s2501_s9 + $0x170] sm:$0xff] }
 0x355   : > { %v1492_v16 = vmul.f32 %v2062_v14, %v1175_v31  ;;  %v1493_v17 = vmul.f32 %v2063_v19, %v1175_v31  ;;  %v2081_v31 = vld [vmem:[%s2501_s9 + $0x178] sm:$0xff]  ;;  %v2082_v19 = vld [vmem:[%s2501_s9 + $0x1b0] sm:$0xff] }
 0x356   : > { %1656 = vst [vmem:[%s3020_s30 + $0x220] sm:$0xff] %v1528_v13 }
 0x357   : > { %1657 = vst [vmem:[%s3020_s30 + $0x228] sm:$0xff] %v1529_v21 }
 0x358   : > { %1620 = vst [vmem:[%s3020_s30 + $0x100] sm:$0xff] %v1492_v16 }
 0x359   : > { %1621 = vst [vmem:[%s3020_s30 + $0x108] sm:$0xff] %v1493_v17  ;;  %1981 = vset.pattern.permute.xlu2 %v2943_v43 }
 0x35a   : > { %1982 = vset.pattern.permute.xlu1 %v2946_v44 }
 0x35b   : > { %v1199_v20 = vpop.permute.xlu2 %1198 }
 0x35c   : > { %v1500_v23 = vmul.f32 %v2064_v22, %v1199_v20  ;;  %v1501_v28 = vmul.f32 %v2065_v24, %v1199_v20  ;;  %v2083_v20 = vld [vmem:[%s2501_s9 + $0x1b8] sm:$0xff]  ;;  %v2084_v24 = vld [vmem:[%s2501_s9 + $0x360] sm:$0xff] }
 0x35e   : > { %1628 = vst [vmem:[%s3020_s30 + $0x140] sm:$0xff] %v1500_v23 }
 0x35f   : > { %1629 = vst [vmem:[%s3020_s30 + $0x148] sm:$0xff] %v1501_v28  ;;  %v2085_v28 = vld [vmem:[%s2501_s9 + $0x368] sm:$0xff] }
 0x361   : > { %1289 = vperm.xlu2 %1981, %v3024_v5  }
 0x362   : > { %1295 = vperm.xlu1 %1982, %v3024_v5  }
 0x363   : > { %v1314_v27 = vpop.permute.xlu0 %1313 }
 0x364   : > { %v1538_v32 = vmul.f32 %v2066_v30, %v1314_v27  ;;  %v1539_v29 = vmul.f32 %v2067_v33, %v1314_v27  ;;  %v1187_v34 = vpop.permute.xlu1 %1186 }
 0x365   : > { %v1496_v36 = vmul.f32 %v2068_v35, %v1187_v34  ;;  %v1497_v38 = vmul.f32 %v2069_v42, %v1187_v34 }
 0x366   : > { %1666 = vst [vmem:[%s3020_s30 + $0x270] sm:$0xff] %v1538_v32  ;;  %v2086_v32 = vld [vmem:[%s2501_s9 + $0x1a0] sm:$0xff] }
 0x367   : > { %1667 = vst [vmem:[%s3020_s30 + $0x278] sm:$0xff] %v1539_v29  ;;  %v2087_v29 = vld [vmem:[%s2501_s9 + $0x1a8] sm:$0xff] }
 0x368   : > { %1624 = vst [vmem:[%s3020_s30 + $0x120] sm:$0xff] %v1496_v36  ;;  %v2088_v36 = vld [vmem:[%s2501_s9 + $0x1e0] sm:$0xff] }
 0x369   : > { %1625 = vst [vmem:[%s3020_s30 + $0x128] sm:$0xff] %v1497_v38  ;;  %1983 = vset.pattern.permute.xlu2 %v2958_v61  ;;  %v2089_v38 = vld [vmem:[%s2501_s9 + $0x1e8] sm:$0xff] }
 0x36a   : > { %1984 = vset.pattern.permute.xlu1 %v2961_v56 }
 0x36b   : > { %v1211_v40 = vpop.permute.xlu2 %1210 }
 0x36c   : > { %v1504_v45 = vmul.f32 %v2070_v39, %v1211_v40  ;;  %v1505_v49 = vmul.f32 %v2071_v47, %v1211_v40 }
 0x36e   : > { %1632 = vst [vmem:[%s3020_s30 + $0x160] sm:$0xff] %v1504_v45  ;;  %v2090_v45 = vld [vmem:[%s2501_s9 + $0x3b0] sm:$0xff] }
 0x36f   : > { %1633 = vst [vmem:[%s3020_s30 + $0x168] sm:$0xff] %v1505_v49  ;;  %v2091_v49 = vld [vmem:[%s2501_s9 + $0x3b8] sm:$0xff] }
 0x371   : > { %1301 = vperm.xlu2 %1983, %v3024_v5  }
 0x372   : > { %1307 = vperm.xlu1 %1984, %v3024_v5  }
 0x373   : > { %v1344_v50 = vpop.permute.xlu0 %1343 }
 0x374   : > { %v1548_v56 = vmul.f32 %v2072_v51, %v1344_v50  ;;  %v1549_v58 = vmul.f32 %v2073_v57, %v1344_v50  ;;  %v1205_v59 = vpop.permute.xlu1 %1204 }
 0x375   : > { %v1502_v2 = vmul.f32 %v2074_v25, %v1205_v59  ;;  %v1503_v60 = vmul.f32 %v2075_v3, %v1205_v59 }
 0x376   : > { %1676 = vst [vmem:[%s3020_s30 + $0x2c0] sm:$0xff] %v1548_v56  ;;  %v2092_v56 = vld [vmem:[%s2501_s9 + $0x1c0] sm:$0xff] }
 0x377   : > { %1677 = vst [vmem:[%s3020_s30 + $0x2c8] sm:$0xff] %v1549_v58  ;;  %v2093_v58 = vld [vmem:[%s2501_s9 + $0x1c8] sm:$0xff] }
 0x378   : > { %1630 = vst [vmem:[%s3020_s30 + $0x150] sm:$0xff] %v1502_v2  ;;  %v2094_v2 = vld [vmem:[%s2501_s9 + $0x200] sm:$0xff] }
 0x379   : > { %1631 = vst [vmem:[%s3020_s30 + $0x158] sm:$0xff] %v1503_v60  ;;  %1986 = vset.pattern.permute.xlu2 %v2973_v62  ;;  %v2095_v60 = vld [vmem:[%s2501_s9 + $0x208] sm:$0xff] }
 0x37a   : > { %1987 = vset.pattern.permute.xlu1 %v2940_v41 }
 0x37b   : > { %v1229_v54 = vpop.permute.xlu2 %1228 }
 0x37c   : > { %v1510_v48 = vmul.f32 %v2076_v4, %v1229_v54  ;;  %v1511_v55 = vmul.f32 %v2077_v18, %v1229_v54 }
 0x37e   : > { %1638 = vst [vmem:[%s3020_s30 + $0x190] sm:$0xff] %v1510_v48  ;;  %v2096_v48 = vld [vmem:[%s2501_s9 + $0x1f0] sm:$0xff] }
 0x37f   : > { %1639 = vst [vmem:[%s3020_s30 + $0x198] sm:$0xff] %v1511_v55 }
 0x381   : > { %1319 = vperm.xlu2 %1986, %v3024_v5  }
 0x382   : > { %1325 = vperm.xlu1 %1987, %v3024_v5  }
 0x383   : > { %v1375_v7 = vpop.permute.xlu0 %1374 }
 0x384   : > { %v1558_v9 = vmul.f32 %v2078_v8, %v1375_v7  ;;  %v1559_v10 = vmul.f32 %v2079_v15, %v1375_v7  ;;  %v1217_v13 = vpop.permute.xlu1 %1216  ;;  %v2098_v7 = vld [vmem:[%s2501_s9 + $0x230] sm:$0xff] }
 0x385   : > { %v1506_v21 = vmul.f32 %v2080_v11, %v1217_v13  ;;  %v1507_v14 = vmul.f32 %v2081_v31, %v1217_v13  ;;  %v2102_v31 = vld [vmem:[%s2501_s9 + $0x250] sm:$0xff] }
 0x386   : > { %1686 = vst [vmem:[%s3020_s30 + $0x310] sm:$0xff] %v1558_v9  ;;  %v2099_v9 = vld [vmem:[%s2501_s9 + $0x238] sm:$0xff] }
 0x387   : > { %1687 = vst [vmem:[%s3020_s30 + $0x318] sm:$0xff] %v1559_v10  ;;  %v2100_v10 = vld [vmem:[%s2501_s9 + $0x210] sm:$0xff] }
 0x388   : > { %1634 = vst [vmem:[%s3020_s30 + $0x170] sm:$0xff] %v1506_v21 }
 0x389   : > { %1635 = vst [vmem:[%s3020_s30 + $0x178] sm:$0xff] %v1507_v14  ;;  %1988 = vset.pattern.permute.xlu2 %v2987_v63 }
 0x38a   : > { %1989 = vset.pattern.permute.xlu1 %v2990_v0 }
 0x38b   : > { %v1241_v16 = vpop.permute.xlu2 %1240 }
 0x38c   : > { %v1514_v17 = vmul.f32 %v2082_v19, %v1241_v16  ;;  %v1515_v22 = vmul.f32 %v2083_v20, %v1241_v16  ;;  %v2103_v16 = vld [vmem:[%s2501_s9 + $0x258] sm:$0xff] }
 0x38e   : > { %1642 = vst [vmem:[%s3020_s30 + $0x1b0] sm:$0xff] %v1514_v17  ;;  %v2104_v17 = vld [vmem:[%s2501_s9 + $0x240] sm:$0xff] }
 0x38f   : > { %1643 = vst [vmem:[%s3020_s30 + $0x1b8] sm:$0xff] %v1515_v22 }
 0x391   : > { %1331 = vperm.xlu2 %1988, %v3024_v5  }
 0x392   : > { %1337 = vperm.xlu1 %1989, %v3024_v5  }
 0x393   : > { %v1405_v23 = vpop.permute.xlu0 %1404 }
 0x394   : > { %v1568_v0 = vmul.f32 %v2084_v24, %v1405_v23  ;;  %v1569_v27 = vmul.f32 %v2085_v28, %v1405_v23  ;;  %v1235_v30 = vpop.permute.xlu1 %1234  ;;  %v2106_v24 = vld [vmem:[%s2501_s9 + $0x280] sm:$0xff]  ;;  %v2107_v28 = vld [vmem:[%s2501_s9 + $0x288] sm:$0xff] }
 0x395   : > { %v1512_v33 = vmul.f32 %v2086_v32, %v1235_v30  ;;  %v1513_v34 = vmul.f32 %v2087_v29, %v1235_v30  ;;  %v2108_v30 = vld [vmem:[%s2501_s9 + $0x260] sm:$0xff] }
 0x396   : > { %1696 = vst [vmem:[%s3020_s30 + $0x360] sm:$0xff] %v1568_v0 }
 0x397   : > { %1697 = vst [vmem:[%s3020_s30 + $0x368] sm:$0xff] %v1569_v27 }
 0x398   : > { %1640 = vst [vmem:[%s3020_s30 + $0x1a0] sm:$0xff] %v1512_v33 }
 0x399   : > { %1641 = vst [vmem:[%s3020_s30 + $0x1a8] sm:$0xff] %v1513_v34  ;;  %1991 = vset.pattern.permute.xlu2 %v2999_v37  ;;  %v2110_v34 = vld [vmem:[%s2501_s9 + $0x2a0] sm:$0xff] }
 0x39a   : > { %1992 = vset.pattern.permute.xlu1 %v2955_v46 }
 0x39b   : > { %v1259_v35 = vpop.permute.xlu2 %1258 }
 0x39c   : > { %v1520_v42 = vmul.f32 %v2088_v36, %v1259_v35  ;;  %v1521_v40 = vmul.f32 %v2089_v38, %v1259_v35  ;;  %v2111_v36 = vld [vmem:[%s2501_s9 + $0x2a8] sm:$0xff]  ;;  %v2112_v38 = vld [vmem:[%s2501_s9 + $0x290] sm:$0xff] }
 0x39e   : > { %1648 = vst [vmem:[%s3020_s30 + $0x1e0] sm:$0xff] %v1520_v42 }
 0x39f   : > { %1649 = vst [vmem:[%s3020_s30 + $0x1e8] sm:$0xff] %v1521_v40 }
 0x3a1   : > { %1349 = vperm.xlu2 %1991, %v3024_v5  }
 0x3a2   : > { %1355 = vperm.xlu1 %1992, %v3024_v5  }
 0x3a3   : > { %v1435_v39 = vpop.permute.xlu0 %1434 }
 0x3a4   : > { %v1578_v47 = vmul.f32 %v2090_v45, %v1435_v39  ;;  %v1579_v50 = vmul.f32 %v2091_v49, %v1435_v39  ;;  %v1247_v51 = vpop.permute.xlu1 %1246 }
 0x3a5   : > { %v1516_v57 = vmul.f32 %v2092_v56, %v1247_v51  ;;  %v1517_v59 = vmul.f32 %v2093_v58, %v1247_v51  ;;  %v2116_v56 = vld [vmem:[%s2501_s9 + $0x2b0] sm:$0xff] }
 0x3a6   : > { %1706 = vst [vmem:[%s3020_s30 + $0x3b0] sm:$0xff] %v1578_v47  ;;  %v2114_v47 = vld [vmem:[%s2501_s9 + $0x2d0] sm:$0xff] }
 0x3a7   : > { %1707 = vst [vmem:[%s3020_s30 + $0x3b8] sm:$0xff] %v1579_v50  ;;  %v2115_v50 = vld [vmem:[%s2501_s9 + $0x2d8] sm:$0xff] }
 0x3a8   : > { %1644 = vst [vmem:[%s3020_s30 + $0x1c0] sm:$0xff] %v1516_v57 }
 0x3a9   : > { %1645 = vst [vmem:[%s3020_s30 + $0x1c8] sm:$0xff] %v1517_v59  ;;  %1993 = vset.pattern.permute.xlu2 %v3011_v1 }
 0x3aa   : > { %1994 = vset.pattern.permute.xlu1 %v2920_v6  ;;  %v2097_v6 = vld [vmem:[%s2501_s9 + $0x1f8] sm:$0xff] }
 0x3ab   : > { %v1272_v25 = vpop.permute.xlu2 %1271 }
 0x3ac   : > { %v1524_v3 = vmul.f32 %v2094_v2, %v1272_v25  ;;  %v1525_v54 = vmul.f32 %v2095_v60, %v1272_v25  ;;  %v2118_v25 = vld [vmem:[%s2501_s9 + $0x2f0] sm:$0xff] }
 0x3ae   : > { %1652 = vst [vmem:[%s3020_s30 + $0x200] sm:$0xff] %v1524_v3  ;;  %v2119_v3 = vld [vmem:[%s2501_s9 + $0x2f8] sm:$0xff] }
 0x3af   : > { %1653 = vst [vmem:[%s3020_s30 + $0x208] sm:$0xff] %v1525_v54  ;;  %v2120_v54 = vld [vmem:[%s2501_s9 + $0x2e0] sm:$0xff] }
 0x3b1   : > { %1361 = vperm.xlu2 %1993, %v3024_v5  }
 0x3b2   : > { %1368 = vperm.xlu1 %1994, %v3073_v52  }
 0x3b4   : > { %v1265_v4 = vpop.permute.xlu1 %1264 }
 0x3b5   : > { %v1522_v18 = vmul.f32 %v2096_v48, %v1265_v4  ;;  %v1523_v55 = vmul.f32 %v2097_v6, %v1265_v4  ;;  %v2121_v4 = vld [vmem:[%s2501_s9 + $0x2e8] sm:$0xff]  ;;  %v2122_v6 = vld [vmem:[%s2501_s9 + $0x320] sm:$0xff] }
 0x3b7   : > { %1650 = vst [vmem:[%s3020_s30 + $0x1f0] sm:$0xff] %v1522_v18 }
 0x3b8   : > { %1651 = vst [vmem:[%s3020_s30 + $0x1f8] sm:$0xff] %v1523_v55 }
 0x3b9   : > { %1996 = vset.pattern.permute.xlu2 %v2924_v12 }
 0x3ba   : > { %1997 = vset.pattern.permute.xlu1 %v2943_v43  ;;  %v2101_v43 = vld [vmem:[%s2501_s9 + $0x218] sm:$0xff] }
 0x3bb   : > { %v1290_v5 = vpop.permute.xlu2 %1289 }
 0x3bc   : > { %v1530_v8 = vmul.f32 %v2098_v7, %v1290_v5  ;;  %v1531_v15 = vmul.f32 %v2099_v9, %v1290_v5  ;;  %v2123_v5 = vld [vmem:[%s2501_s9 + $0x328] sm:$0xff] }
 0x3be   : > { %1658 = vst [vmem:[%s3020_s30 + $0x230] sm:$0xff] %v1530_v8  ;;  %v2124_v8 = vld [vmem:[%s2501_s9 + $0x300] sm:$0xff] }
 0x3bf   : > { %1659 = vst [vmem:[%s3020_s30 + $0x238] sm:$0xff] %v1531_v15  ;;  %v2125_v15 = vld [vmem:[%s2501_s9 + $0x308] sm:$0xff] }
 0x3c1   : > { %1380 = vperm.xlu2 %1996, %v3073_v52  }
 0x3c2   : > { %1386 = vperm.xlu1 %1997, %v3073_v52  }
 0x3c4   : > { %v1278_v12 = vpop.permute.xlu1 %1277 }
 0x3c5   : > { %v1526_v13 = vmul.f32 %v2100_v10, %v1278_v12  ;;  %v1527_v11 = vmul.f32 %v2101_v43, %v1278_v12 }
 0x3c7   : > { %1654 = vst [vmem:[%s3020_s30 + $0x210] sm:$0xff] %v1526_v13  ;;  %v2126_v13 = vld [vmem:[%s2501_s9 + $0x340] sm:$0xff] }
 0x3c8   : > { %1655 = vst [vmem:[%s3020_s30 + $0x218] sm:$0xff] %v1527_v11  ;;  %v2127_v11 = vld [vmem:[%s2501_s9 + $0x348] sm:$0xff] }
 0x3c9   : > { %1998 = vset.pattern.permute.xlu2 %v2946_v44 }
 0x3ca   : > { %1999 = vset.pattern.permute.xlu1 %v2958_v61  ;;  %v2105_v61 = vld [vmem:[%s2501_s9 + $0x248] sm:$0xff] }
 0x3cb   : > { %v1302_v21 = vpop.permute.xlu2 %1301 }
 0x3cc   : > { %v1534_v14 = vmul.f32 %v2102_v31, %v1302_v21  ;;  %v1535_v19 = vmul.f32 %v2103_v16, %v1302_v21 }
 0x3ce   : > { %1662 = vst [vmem:[%s3020_s30 + $0x250] sm:$0xff] %v1534_v14  ;;  %v2128_v14 = vld [vmem:[%s2501_s9 + $0x330] sm:$0xff] }
 0x3cf   : > { %1663 = vst [vmem:[%s3020_s30 + $0x258] sm:$0xff] %v1535_v19  ;;  %v2129_v19 = vld [vmem:[%s2501_s9 + $0x338] sm:$0xff] }
 0x3d1   : > { %1392 = vperm.xlu2 %1998, %v3073_v52  }
 0x3d2   : > { %1398 = vperm.xlu1 %1999, %v3073_v52  }
 0x3d4   : > { %v1296_v44 = vpop.permute.xlu1 %1295 }
 0x3d5   : > { %v1532_v20 = vmul.f32 %v2104_v17, %v1296_v44  ;;  %v1533_v22 = vmul.f32 %v2105_v61, %v1296_v44 }
 0x3d7   : > { %1660 = vst [vmem:[%s3020_s30 + $0x240] sm:$0xff] %v1532_v20  ;;  %v2130_v20 = vld [vmem:[%s2501_s9 + $0x370] sm:$0xff] }
 0x3d8   : > { %1661 = vst [vmem:[%s3020_s30 + $0x248] sm:$0xff] %v1533_v22  ;;  %v2131_v22 = vld [vmem:[%s2501_s9 + $0x378] sm:$0xff] }
 0x3d9   : > { %2001 = vset.pattern.permute.xlu2 %v2970_v53 }
 0x3da   : > { %2002 = vset.pattern.permute.xlu1 %v2973_v62  ;;  %v2109_v62 = vld [vmem:[%s2501_s9 + $0x268] sm:$0xff] }
 0x3db   : > { %v1320_v23 = vpop.permute.xlu2 %1319 }
 0x3dc   : > { %v1540_v0 = vmul.f32 %v2106_v24, %v1320_v23  ;;  %v1541_v27 = vmul.f32 %v2107_v28, %v1320_v23 }
 0x3de   : > { %1668 = vst [vmem:[%s3020_s30 + $0x280] sm:$0xff] %v1540_v0  ;;  %v2132_v0 = vld [vmem:[%s2501_s9 + $0x350] sm:$0xff] }
 0x3df   : > { %1669 = vst [vmem:[%s3020_s30 + $0x288] sm:$0xff] %v1541_v27  ;;  %v2133_v27 = vld [vmem:[%s2501_s9 + $0x358] sm:$0xff] }
 0x3e1   : > { %1410 = vperm.xlu2 %2001, %v3073_v52  }
 0x3e2   : > { %1416 = vperm.xlu1 %2002, %v3073_v52  }
 0x3e4   : > { %v1308_v53 = vpop.permute.xlu1 %1307 }
 0x3e5   : > { %v1536_v32 = vmul.f32 %v2108_v30, %v1308_v53  ;;  %v1537_v33 = vmul.f32 %v2109_v62, %v1308_v53 }
 0x3e7   : > { %1664 = vst [vmem:[%s3020_s30 + $0x260] sm:$0xff] %v1536_v32  ;;  %v2134_v32 = vld [vmem:[%s2501_s9 + $0x390] sm:$0xff] }
 0x3e8   : > { %1665 = vst [vmem:[%s3020_s30 + $0x268] sm:$0xff] %v1537_v33  ;;  %v2135_v33 = vld [vmem:[%s2501_s9 + $0x398] sm:$0xff] }
 0x3e9   : > { %2003 = vset.pattern.permute.xlu2 %v2940_v41 }
 0x3ea   : > { %2004 = vset.pattern.permute.xlu1 %v2987_v63  ;;  %v2113_v63 = vld [vmem:[%s2501_s9 + $0x298] sm:$0xff] }
 0x3eb   : > { %v1332_v29 = vpop.permute.xlu2 %1331 }
 0x3ec   : > { %v1544_v35 = vmul.f32 %v2110_v34, %v1332_v29  ;;  %v1545_v42 = vmul.f32 %v2111_v36, %v1332_v29 }
 0x3ee   : > { %1672 = vst [vmem:[%s3020_s30 + $0x2a0] sm:$0xff] %v1544_v35  ;;  %v2136_v35 = vld [vmem:[%s2501_s9 + $0x380] sm:$0xff] }
 0x3ef   : > { %1673 = vst [vmem:[%s3020_s30 + $0x2a8] sm:$0xff] %v1545_v42  ;;  %v2137_v42 = vld [vmem:[%s2501_s9 + $0x388] sm:$0xff] }
 0x3f1   : > { %1422 = vperm.xlu2 %2003, %v3073_v52  }
 0x3f2   : > { %1428 = vperm.xlu1 %2004, %v3073_v52  }
 0x3f4   : > { %v1326_v41 = vpop.permute.xlu1 %1325 }
 0x3f5   : > { %v1542_v40 = vmul.f32 %v2112_v38, %v1326_v41  ;;  %v1543_v39 = vmul.f32 %v2113_v63, %v1326_v41 }
 0x3f7   : > { %1670 = vst [vmem:[%s3020_s30 + $0x290] sm:$0xff] %v1542_v40  ;;  %v2138_v40 = vld [vmem:[%s2501_s9 + $0x3c0] sm:$0xff] }
 0x3f8   : > { %1671 = vst [vmem:[%s3020_s30 + $0x298] sm:$0xff] %v1543_v39  ;;  %v2139_v39 = vld [vmem:[%s2501_s9 + $0x3c8] sm:$0xff] }
 0x3f9   : > { %2006 = vset.pattern.permute.xlu2 %v3002_v26 }
 0x3fa   : > { %2007 = vset.pattern.permute.xlu1 %v2999_v37  ;;  %v2117_v37 = vld [vmem:[%s2501_s9 + $0x2b8] sm:$0xff] }
 0x3fb   : > { %v1350_v45 = vpop.permute.xlu2 %1349 }
 0x3fc   : > { %v1550_v49 = vmul.f32 %v2114_v47, %v1350_v45  ;;  %v1551_v51 = vmul.f32 %v2115_v50, %v1350_v45 }
 0x3fe   : > { %1678 = vst [vmem:[%s3020_s30 + $0x2d0] sm:$0xff] %v1550_v49  ;;  %v2140_v49 = vld [vmem:[%s2501_s9 + $0x3a0] sm:$0xff] }
 0x3ff   : > { %1679 = vst [vmem:[%s3020_s30 + $0x2d8] sm:$0xff] %v1551_v51  ;;  %v2141_v51 = vld [vmem:[%s2501_s9 + $0x3a8] sm:$0xff] }
 0x401   : > { %1440 = vperm.xlu2 %2006, %v3073_v52  }
 0x402   : > { %1446 = vperm.xlu1 %2007, %v3073_v52  }
 0x404   : > { %v1338_v26 = vpop.permute.xlu1 %1337 }
 0x405   : > { %v1546_v57 = vmul.f32 %v2116_v56, %v1338_v26  ;;  %v1547_v58 = vmul.f32 %v2117_v37, %v1338_v26 }
 0x407   : > { %1674 = vst [vmem:[%s3020_s30 + $0x2b0] sm:$0xff] %v1546_v57  ;;  %v2142_v57 = vld [vmem:[%s2501_s9 + $0x3e0] sm:$0xff] }
 0x408   : > { %1675 = vst [vmem:[%s3020_s30 + $0x2b8] sm:$0xff] %v1547_v58  ;;  %v2143_v58 = vld [vmem:[%s2501_s9 + $0x3e8] sm:$0xff] }
 0x409   : > { %2008 = vset.pattern.permute.xlu2 %v2955_v46 }
 0x40a   : > { %2009 = vset.pattern.permute.xlu1 %v3011_v1 }
 0x40b   : > { %v1362_v59 = vpop.permute.xlu2 %1361 }
 0x40c   : > { %v1554_v2 = vmul.f32 %v2118_v25, %v1362_v59  ;;  %v1555_v60 = vmul.f32 %v2119_v3, %v1362_v59 }
 0x40e   : > { %1682 = vst [vmem:[%s3020_s30 + $0x2f0] sm:$0xff] %v1554_v2  ;;  %v2144_v2 = vld [vmem:[%s2501_s9 + $0x3d0] sm:$0xff] }
 0x40f   : > { %1683 = vst [vmem:[%s3020_s30 + $0x2f8] sm:$0xff] %v1555_v60  ;;  %v2145_v60 = vld [vmem:[%s2501_s9 + $0x3d8] sm:$0xff] }
 0x411   : > { %1452 = vperm.xlu2 %2008, %v3073_v52  }
 0x412   : > { %1458 = vperm.xlu1 %2009, %v3073_v52  }
 0x414   : > { %v1356_v46 = vpop.permute.xlu1 %1355 }
 0x415   : > { %v1552_v1 = vmul.f32 %v2120_v54, %v1356_v46  ;;  %v1553_v48 = vmul.f32 %v2121_v4, %v1356_v46 }
 0x417   : > { %1680 = vst [vmem:[%s3020_s30 + $0x2e0] sm:$0xff] %v1552_v1  ;;  %v2146_v1 = vld [vmem:[%s2501_s9 + $0x3f0] sm:$0xff] }
 0x418   : > { %1681 = vst [vmem:[%s3020_s30 + $0x2e8] sm:$0xff] %v1553_v48  ;;  %v2147_v48 = vld [vmem:[%s2501_s9 + $0x3f8] sm:$0xff] }
 0x41b   : > { %v1381_v18 = vpop.permute.xlu2 %1380 }
 0x41c   : > { %v1560_v55 = vmul.f32 %v2122_v6, %v1381_v18  ;;  %v1561_v7 = vmul.f32 %v2123_v5, %v1381_v18 }
 0x41e   : > { %1688 = vst [vmem:[%s3020_s30 + $0x320] sm:$0xff] %v1560_v55 }
 0x41f   : > { %1689 = vst [vmem:[%s3020_s30 + $0x328] sm:$0xff] %v1561_v7 }
 0x424   : > { %v1369_v52 = vpop.permute.xlu1 %1368 }
 0x425   : > { %v1556_v9 = vmul.f32 %v2124_v8, %v1369_v52  ;;  %v1557_v12 = vmul.f32 %v2125_v15, %v1369_v52 }
 0x427   : > { %1684 = vst [vmem:[%s3020_s30 + $0x300] sm:$0xff] %v1556_v9 }
 0x428   : > { %1685 = vst [vmem:[%s3020_s30 + $0x308] sm:$0xff] %v1557_v12 }
 0x42b   : > { %v1393_v10 = vpop.permute.xlu2 %1392 }
 0x42c   : > { %v1564_v43 = vmul.f32 %v2126_v13, %v1393_v10  ;;  %v1565_v21 = vmul.f32 %v2127_v11, %v1393_v10 }
 0x42e   : > { %1692 = vst [vmem:[%s3020_s30 + $0x340] sm:$0xff] %v1564_v43 }
 0x42f   : > { %1693 = vst [vmem:[%s3020_s30 + $0x348] sm:$0xff] %v1565_v21 }
 0x434   : > { %v1387_v31 = vpop.permute.xlu1 %1386 }
 0x435   : > { %v1562_v16 = vmul.f32 %v2128_v14, %v1387_v31  ;;  %v1563_v44 = vmul.f32 %v2129_v19, %v1387_v31 }
 0x437   : > { %1690 = vst [vmem:[%s3020_s30 + $0x330] sm:$0xff] %v1562_v16 }
 0x438   : > { %1691 = vst [vmem:[%s3020_s30 + $0x338] sm:$0xff] %v1563_v44 }
 0x43b   : > { %v1411_v17 = vpop.permute.xlu2 %1410 }
 0x43c   : > { %v1570_v61 = vmul.f32 %v2130_v20, %v1411_v17  ;;  %v1571_v23 = vmul.f32 %v2131_v22, %v1411_v17 }
 0x43e   : > { %1698 = vst [vmem:[%s3020_s30 + $0x370] sm:$0xff] %v1570_v61 }
 0x43f   : > { %1699 = vst [vmem:[%s3020_s30 + $0x378] sm:$0xff] %v1571_v23 }
 0x444   : > { %v1399_v24 = vpop.permute.xlu1 %1398 }
 0x445   : > { %v1566_v28 = vmul.f32 %v2132_v0, %v1399_v24  ;;  %v1567_v53 = vmul.f32 %v2133_v27, %v1399_v24 }
 0x447   : > { %1694 = vst [vmem:[%s3020_s30 + $0x350] sm:$0xff] %v1566_v28 }
 0x448   : > { %1695 = vst [vmem:[%s3020_s30 + $0x358] sm:$0xff] %v1567_v53 }
 0x44b   : > { %v1423_v30 = vpop.permute.xlu2 %1422 }
 0x44c   : > { %v1574_v62 = vmul.f32 %v2134_v32, %v1423_v30  ;;  %v1575_v29 = vmul.f32 %v2135_v33, %v1423_v30 }
 0x44e   : > { %1702 = vst [vmem:[%s3020_s30 + $0x390] sm:$0xff] %v1574_v62 }
 0x44f   : > { %1703 = vst [vmem:[%s3020_s30 + $0x398] sm:$0xff] %v1575_v29 }
 0x454   : > { %v1417_v34 = vpop.permute.xlu1 %1416 }
 0x455   : > { %v1572_v36 = vmul.f32 %v2136_v35, %v1417_v34  ;;  %v1573_v41 = vmul.f32 %v2137_v42, %v1417_v34 }
 0x457   : > { %1700 = vst [vmem:[%s3020_s30 + $0x380] sm:$0xff] %v1572_v36 }
 0x458   : > { %1701 = vst [vmem:[%s3020_s30 + $0x388] sm:$0xff] %v1573_v41 }
 0x45b   : > { %v1441_v38 = vpop.permute.xlu2 %1440 }
 0x45c   : > { %v1580_v63 = vmul.f32 %v2138_v40, %v1441_v38  ;;  %v1581_v45 = vmul.f32 %v2139_v39, %v1441_v38 }
 0x45e   : > { %1708 = vst [vmem:[%s3020_s30 + $0x3c0] sm:$0xff] %v1580_v63 }
 0x45f   : > { %1709 = vst [vmem:[%s3020_s30 + $0x3c8] sm:$0xff] %v1581_v45 }
 0x464   : > { %v1429_v47 = vpop.permute.xlu1 %1428 }
 0x465   : > { %v1576_v50 = vmul.f32 %v2140_v49, %v1429_v47  ;;  %v1577_v26 = vmul.f32 %v2141_v51, %v1429_v47 }
 0x467   : > { %1704 = vst [vmem:[%s3020_s30 + $0x3a0] sm:$0xff] %v1576_v50 }
 0x468   : > { %1705 = vst [vmem:[%s3020_s30 + $0x3a8] sm:$0xff] %v1577_v26 }
 0x46b   : > { %v1453_v56 = vpop.permute.xlu2 %1452 }
 0x46c   : > { %v1584_v37 = vmul.f32 %v2142_v57, %v1453_v56  ;;  %v1585_v59 = vmul.f32 %v2143_v58, %v1453_v56 }
 0x46e   : > { %1712 = vst [vmem:[%s3020_s30 + $0x3e0] sm:$0xff] %v1584_v37 }
 0x46f   : > { %1713 = vst [vmem:[%s3020_s30 + $0x3e8] sm:$0xff] %v1585_v59 }
 0x474   : > { %v1447_v25 = vpop.permute.xlu1 %1446 }
 0x475   : > { %v1582_v3 = vmul.f32 %v2144_v2, %v1447_v25  ;;  %v1583_v46 = vmul.f32 %v2145_v60, %v1447_v25 }
 0x477   : > { %1710 = vst [vmem:[%s3020_s30 + $0x3d0] sm:$0xff] %v1582_v3 }
 0x478   : > { %1711 = vst [vmem:[%s3020_s30 + $0x3d8] sm:$0xff] %v1583_v46 }
 0x484   : > { %v1459_v54 = vpop.permute.xlu1 %1458 }
 0x485   : > { %v1586_v4 = vmul.f32 %v2146_v1, %v1459_v54  ;;  %v1587_v18 = vmul.f32 %v2147_v48, %v1459_v54 }
 0x487   : > { %1714 = vst [vmem:[%s3020_s30 + $0x3f0] sm:$0xff] %v1586_v4 }
 0x488   : > { %1715 = vst [vmem:[%s3020_s30 + $0x3f8] sm:$0xff] %v1587_v18 }
 0x489   : > { %2295 = shalt.err (!%p2292_p10)
}
 0x48a   : > { %s2349_s17 = smov 256   ;;  %s2350_s9 = smov 16  }
 0x48b   : > { %1879 = dma.vmem_to_hbm [thread:$0]  (%p2465_p0), %s1731_s16, 16384, %s1733_s23, %s1717_s26, %s2349_s17, %s2349_s17, %s2350_s9  }
 0x48c PF: > { %p1906_p11 = scmp.ge.s32.totalorder %s2342_s21, 2  ;;  %s1747_s30 = sand.u32 1, %s2330_s18  }
 0x48d   : > { %s1748_s13 = scalar_lea.sflag [#allocation4], %s1747_s30 }
 0x48e   : > { %p1896_p12 = pnand %p1906_p11, %p2416_p6 }
 0x490   : > { %p1897_p13 = pneg %p1896_p12 }
 0x492   : > { %2325 = dma.done.wait (%p1897_p13), %s1748_s13, 16384  }
 0x493   : > { %2327 = vsyncadd (%p1897_p13), %s1748_s13, 4294950912  ;;  %p20_p3 = scmp.ge.s32.totalorder %s2452_s27, 10   ;;  %s3419_s18 = smov %s2334_s19 }
 0x494   : > { %s3420_s19 = smov %s2338_s20  ;;  %s3421_s20 = smov %s2461_s6 }
 0x495   : > { %s3422_s21 = smov %s2452_s27  ;;  %22 = sbr.rel (!%p20_p3) target bundleno = 7 (0x7), region = 97 }
 0x49a   :  { %1754 = vsyncpa [#allocation3], 1 }
 0x49b   :  { %1756 = vsyncpa [#allocation3 + $0x1], 1 }
 0x49c   :  { %1757 = vsyncpa [#allocation6], 1 }
 0x49d   :  { %1758 = vsyncpa [#allocation9], 1 }
 0x49e   :  { %1759 = vsyncpa [#allocation4], 1 }
 0x49f   :  { %1761 = vsyncpa [#allocation4 + $0x1], 1 }

</bundles_post_ra>
